<compile_context>
chip_gen: v5e
topology: v5e:2x2
jax: 0.10.0
libtpu: 0.0.40
codegen_flags: <defaults>
</compile_context>

<pallas_src>
import functools
import math

import jax
import jax.numpy as jnp
from jax.experimental import pallas as pl
from jax.experimental.pallas import tpu as pltpu


def _round_up(v, m):
    return (v + m - 1) // m * m


# ---------------------------------------------------------------------------
# Linear: y = x @ W^T + b  [+ GELU]  [+ fused residual-add + LayerNorm]
# Weights are pre-transposed ONCE to a lane-dense bf16 (K, N_pad) layout.
# ---------------------------------------------------------------------------
def _linear_epilogue(out, bias, o_ref, activation, ln):
    out = out + bias
    if activation == "gelu":
        out = jax.nn.gelu(out, approximate=True)
    if ln is not None:
        res, gamma, beta, n_valid, eps = ln
        xr = out + res
        # LayerNorm over the first n_valid columns only (lane padding is zero).
        col = jax.lax.broadcasted_iota(jnp.int32, xr.shape, 1)
        valid = col < n_valid
        inv_n = 1.0 / n_valid
        mu = jnp.sum(jnp.where(valid, xr, 0.0), axis=-1, keepdims=True) * inv_n
        diff = jnp.where(valid, xr - mu, 0.0)
        var = jnp.sum(diff * diff, axis=-1, keepdims=True) * inv_n
        out = diff * jax.lax.rsqrt(var + eps) * gamma + beta
    o_ref[...] = out.astype(o_ref.dtype)


def _make_linear_kernel(activation, fuse_ln, n_valid, eps, use_acc):
    if fuse_ln:
        if use_acc:
            def kernel(x_ref, w_ref, b_ref, r_ref, g_ref, bb_ref, o_ref, acc_ref):
                @pl.when(pl.program_id(2) == 0)
                def _init():
                    acc_ref[...] = jnp.zeros_like(acc_ref)

                acc_ref[...] += jnp.dot(
                    x_ref[...].astype(jnp.bfloat16), w_ref[...],
                    preferred_element_type=jnp.float32)

                @pl.when(pl.program_id(2) == pl.num_programs(2) - 1)
                def _store():
                    _linear_epilogue(
                        acc_ref[...], b_ref[...], o_ref, activation,
                        (r_ref[...].astype(jnp.float32), g_ref[...],
                         bb_ref[...], n_valid, eps))
        else:
            def kernel(x_ref, w_ref, b_ref, r_ref, g_ref, bb_ref, o_ref):
                out = jnp.dot(x_ref[...].astype(jnp.bfloat16), w_ref[...],
                              preferred_element_type=jnp.float32)
                _linear_epilogue(
                    out, b_ref[...], o_ref, activation,
                    (r_ref[...].astype(jnp.float32), g_ref[...],
                     bb_ref[...], n_valid, eps))
    else:
        if use_acc:
            def kernel(x_ref, w_ref, b_ref, o_ref, acc_ref):
                @pl.when(pl.program_id(2) == 0)
                def _init():
                    acc_ref[...] = jnp.zeros_like(acc_ref)

                acc_ref[...] += jnp.dot(
                    x_ref[...].astype(jnp.bfloat16), w_ref[...],
                    preferred_element_type=jnp.float32)

                @pl.when(pl.program_id(2) == pl.num_programs(2) - 1)
                def _store():
                    _linear_epilogue(acc_ref[...], b_ref[...], o_ref,
                                     activation, None)
        else:
            def kernel(x_ref, w_ref, b_ref, o_ref):
                out = jnp.dot(x_ref[...].astype(jnp.bfloat16), w_ref[...],
                              preferred_element_type=jnp.float32)
                _linear_epilogue(out, b_ref[...], o_ref, activation, None)
    return kernel


def prep_linear(weight_out_in, bias):
    """One-time prep: PyTorch (out,in) weight -> bf16 lane-dense padded (in, N_pad)."""
    n, k = weight_out_in.shape
    n_pad = _round_up(n, 128)
    w = jnp.zeros((k, n_pad), jnp.bfloat16)
    w = w.at[:, :n].set(weight_out_in.T.astype(jnp.bfloat16))
    b = jnp.zeros((1, n_pad), jnp.float32).at[0, :n].set(bias.astype(jnp.float32))
    return w, b


def prep_layernorm(gamma, beta, n_pad):
    """One-time prep: pad LN affine params to the fused linear's lane width."""
    n = gamma.shape[0]
    g = jnp.zeros((1, n_pad), jnp.float32).at[0, :n].set(gamma.astype(jnp.float32))
    b = jnp.zeros((1, n_pad), jnp.float32).at[0, :n].set(beta.astype(jnp.float32))
    return g, b


def linear(x2d, w_pad, b_pad, n_out, activation=None,
           residual=None, ln_gamma=None, ln_beta=None, eps=1e-5):
    M, K = x2d.shape
    Kw, N_pad = w_pad.shape
    assert Kw == K
    fuse_ln = residual is not None

    # ---- tile selection ----------------------------------------------------
    if M >= 512 and not fuse_ln:
        TM = 512
    elif M >= 256:
        TM = 256
    else:
        TM = _round_up(M, 8)
    M_pad = _round_up(M, TM)

    if fuse_ln:
        # Whole output row must be resident so LN stats fit in the epilogue.
        # TODO(synk): fall back to a standalone add+LN kernel when N_pad is so
        # large that a (TM, N_pad) f32 block no longer fits in VMEM.
        TN = N_pad
    else:
        TN = next(t for t in (512, 256, 128) if N_pad % t == 0)

    TK = K
    if K > 1024:
        for t in (1024, 512, 256, 128):
            if K % t == 0:
                TK = t
                break
    use_acc = (K // TK) > 1

    if M_pad != M:
        x2d = jnp.pad(x2d, ((0, M_pad - M), (0, 0)))

    inputs = [x2d, w_pad, b_pad]
    in_specs = [
        pl.BlockSpec((TM, TK), lambda i, j, k: (i, k)),
        pl.BlockSpec((TK, TN), lambda i, j, k: (k, j)),
        pl.BlockSpec((1, TN), lambda i, j, k: (0, j)),
    ]
    if fuse_ln:
        Mr, Dr = residual.shape
        res = jnp.pad(residual.astype(jnp.float32),
                      ((0, M_pad - Mr), (0, N_pad - Dr)))
        assert ln_gamma.shape == (1, N_pad) and ln_beta.shape == (1, N_pad)
        inputs += [res, ln_gamma, ln_beta]
        in_specs += [
            pl.BlockSpec((TM, TN), lambda i, j, k: (i, j)),
            pl.BlockSpec((1, TN), lambda i, j, k: (0, j)),
            pl.BlockSpec((1, TN), lambda i, j, k: (0, j)),
        ]

    kernel = _make_linear_kernel(activation, fuse_ln, n_out, eps, use_acc)
    scratch = [pltpu.VMEM((TM, TN), jnp.float32)] if use_acc else []

    itemsize = x2d.dtype.itemsize
    cost = pl.CostEstimate(
        flops=2 * M_pad * N_pad * K,
        transcendentals=(M_pad * N_pad if activation == "gelu" else 0),
        bytes_accessed=(itemsize * M_pad * K * (N_pad // TN)       # x re-read per j
                        + 2 * K * N_pad * (M_pad // TM)            # bf16 weights
                        + itemsize * M_pad * N_pad                 # output
                        + (4 * M_pad * N_pad if fuse_ln else 0)),  # residual
    )

    # Rough per-step VMEM footprint (double-buffered ins/outs + accumulator);
    # only raise the scoped limit beyond the 32 MiB default when needed
    # (kept <= 64 MiB so it is valid on v7x as well).
    est = 2 * (TM * TK * itemsize + TK * TN * 2 + TM * TN * itemsize)
    est += TM * TN * 4 if use_acc else 0
    est += 2 * (TM * TN * 4 + 2 * TN * 4) if fuse_ln else 0
    vmem_limit = 64 * 1024 * 1024 if est > 28 * 1024 * 1024 else None

    out = pl.pallas_call(
        kernel,
        out_shape=jax.ShapeDtypeStruct((M_pad, N_pad), x2d.dtype),
        grid_spec=pltpu.PrefetchScalarGridSpec(
            num_scalar_prefetch=0,
            grid=(M_pad // TM, N_pad // TN, K // TK),
            in_specs=in_specs,
            out_specs=pl.BlockSpec((TM, TN), lambda i, j, k: (i, j)),
            scratch_shapes=scratch,
        ),
        compiler_params=pltpu.CompilerParams(
            dimension_semantics=("parallel", "parallel", "arbitrary"),
            vmem_limit_bytes=vmem_limit,
        ),
        cost_estimate=cost,
    )(*inputs)

    return out[:M, :n_out]


# ---------------------------------------------------------------------------
# Flash attention (causal), heads packed along the lane dim: q/k/v are (B,S,D)
# ---------------------------------------------------------------------------
def _flash_attn_kernel(q_ref, k_ref, v_ref, o_ref, m_ref, l_ref, acc_ref, *,
                       num_heads, head_dim, scale, seq_len, block):
    qi = pl.program_id(1)
    ki = pl.program_id(2)

    @pl.when(ki == 0)
    def _init():
        m_ref[...] = jnp.full(m_ref.shape, -1e30, jnp.float32)
        l_ref[...] = jnp.zeros(l_ref.shape, jnp.float32)
        acc_ref[...] = jnp.zeros(acc_ref.shape, jnp.float32)

    # Causal block skip: with TQ == TKV, blocks strictly above the diagonal are
    # fully masked -> skip their compute entirely (halves attention MXU work).
    @pl.when(ki <= qi)
    def _compute():
        q2d = q_ref[0].astype(jnp.bfloat16)      # (T, D): all heads, lane packed
        k2d = k_ref[0].astype(jnp.bfloat16)
        v2d = v_ref[0].astype(jnp.bfloat16)
        row = qi * block + jax.lax.broadcasted_iota(jnp.int32, (block, block), 0)
        col = ki * block + jax.lax.broadcasted_iota(jnp.int32, (block, block), 1)
        mask = (col <= row) & (col < seq_len)

        # Static unroll over the heads packed into this block (no Dh->128 pad).
        for h in range(num_heads):
            sl = slice(h * head_dim, (h + 1) * head_dim)
            q_h = q2d[:, sl]
            k_h = k2d[:, sl]
            v_h = v2d[:, sl]
            s = jax.lax.dot_general(
                q_h, k_h, (((1,), (1,)), ((), ())),
                preferred_element_type=jnp.float32) * scale
            s = jnp.where(mask, s, -1e30)
            m_prev = m_ref[h]                                  # (T, 1)
            m_new = jnp.maximum(m_prev, jnp.max(s, axis=-1, keepdims=True))
            alpha = jnp.exp(m_prev - m_new)
            p = jnp.exp(s - m_new)
            l_ref[h] = alpha * l_ref[h] + jnp.sum(p, axis=-1, keepdims=True)
            acc_ref[h] = alpha * acc_ref[h] + jax.lax.dot_general(
                p.astype(jnp.bfloat16), v_h, (((1,), (0,)), ((), ())),
                preferred_element_type=jnp.float32)
            m_ref[h] = m_new

    @pl.when(ki == pl.num_programs(2) - 1)
    def _store():
        for h in range(num_heads):
            inv_l = pl.reciprocal(l_ref[h], approx=True)       # EUP slot, ~free
            o_ref[0, :, h * head_dim:(h + 1) * head_dim] = (
                acc_ref[h] * inv_l).astype(o_ref.dtype)


def flash_attention(q, k, v, num_heads):
    """Causal MHA with flash tiling; q/k/v: (B, S, D), heads packed along lanes."""
    B, S, D = q.shape
    head_dim = D // num_heads
    T = 256 if S >= 256 else _round_up(S, 8)
    S_pad = _round_up(S, T)
    if S_pad != S:
        pad = ((0, 0), (0, S_pad - S), (0, 0))
        q, k, v = jnp.pad(q, pad), jnp.pad(k, pad), jnp.pad(v, pad)
    n_blk = S_pad // T

    kernel = functools.partial(
        _flash_attn_kernel, num_heads=num_heads, head_dim=head_dim,
        scale=1.0 / math.sqrt(head_dim), seq_len=S, block=T)

    q_spec = pl.BlockSpec((1, T, D), lambda b, qi, ki: (b, qi, 0))
    # Clamp the KV block index so skipped (fully masked) blocks do not trigger
    # fresh HBM fetches.
    kv_spec = pl.BlockSpec((1, T, D), lambda b, qi, ki: (b, jnp.minimum(ki, qi), 0))

    out = pl.pallas_call(
        kernel,
        out_shape=jax.ShapeDtypeStruct((B, S_pad, D), q.dtype),
        grid_spec=pltpu.PrefetchScalarGridSpec(
            num_scalar_prefetch=0,
            grid=(B, n_blk, n_blk),
            in_specs=[q_spec, kv_spec, kv_spec],
            out_specs=pl.BlockSpec((1, T, D), lambda b, qi, ki: (b, qi, 0)),
            scratch_shapes=[
                pltpu.VMEM((num_heads, T, 1), jnp.float32),         # running max
                pltpu.VMEM((num_heads, T, 1), jnp.float32),         # running denom
                pltpu.VMEM((num_heads, T, head_dim), jnp.float32),  # output acc
            ],
        ),
        compiler_params=pltpu.CompilerParams(
            dimension_semantics=("parallel", "parallel", "arbitrary")),
    )(q, k, v)
    return out[:, :S, :]


# ---------------------------------------------------------------------------
# Full decoder layer forward (POST norm, no dropout)
# ---------------------------------------------------------------------------
def make_decoder_forward(model_dim, num_heads, ffn_dim):
    assert model_dim % num_heads == 0

    def forward(x, p):
        B, S, D = x.shape
        x2d = x.reshape(B * S, D)

        # ---- sequence mixer: causal multi-head self-attention ------------
        residual = x2d
        qkv = linear(x2d, p["wqkv"], p["bqkv"], 3 * D)         # (B*S, 3D)
        qkv = qkv.reshape(B, S, 3 * D)
        # Heads stay packed along the lane dim -> no (B,H,S,Dh) transposes.
        # TODO(synk): when model_dim % 128 == 0 these three slices can be folded
        #             directly into the attention BlockSpec index maps.
        q = qkv[:, :, 0:D]
        k = qkv[:, :, D:2 * D]
        v = qkv[:, :, 2 * D:3 * D]
        attn = flash_attention(q, k, v, num_heads)             # (B, S, D)
        # Output projection with fused residual-add + LayerNorm epilogue.
        x2d = linear(attn.reshape(B * S, D), p["wo"], p["bo"], D,
                     residual=residual, ln_gamma=p["ln1_g"], ln_beta=p["ln1_b"])

        # ---- state mixer: GELU FFN (fused GELU up-proj, fused add+LN down-proj)
        residual = x2d
        h = linear(x2d, p["w1"], p["b1"], ffn_dim, activation="gelu")
        x2d = linear(h, p["w2"], p["b2"], D,
                     residual=residual, ln_gamma=p["ln2_g"], ln_beta=p["ln2_b"])

        return x2d.reshape(B, S, D)

    return jax.jit(forward)


# ---------------------------------------------------------------------------
# Pure-JAX reference (same math, for correctness checking)
# ---------------------------------------------------------------------------
def ref_forward(x, raw, num_heads):
    eps = 1e-5

    def lin(h, w, b):
        return h @ w.T + b

    def ln(h, g, b):
        mu = jnp.mean(h, axis=-1, keepdims=True)
        var = jnp.mean(jnp.square(h - mu), axis=-1, keepdims=True)
        return (h - mu) * jax.lax.rsqrt(var + eps) * g + b

    B, S, D = x.shape
    Dh = D // num_heads

    residual = x
    qkv = lin(x, raw["wqkv"], raw["bqkv"])
    q = qkv[..., 0:D].reshape(B, S, num_heads, Dh).transpose(0, 2, 1, 3)
    k = qkv[..., D:2 * D].reshape(B, S, num_heads, Dh).transpose(0, 2, 1, 3)
    v = qkv[..., 2 * D:].reshape(B, S, num_heads, Dh).transpose(0, 2, 1, 3)
    s = jnp.einsum("bhqd,bhkd->bhqk", q, k) / math.sqrt(Dh)
    mask = jnp.tril(jnp.ones((S, S), dtype=bool))
    s = jnp.where(mask, s, -1e30)
    p = jax.nn.softmax(s, axis=-1)
    o = jnp.einsum("bhqk,bhkd->bhqd", p, v)
    o = o.transpose(0, 2, 1, 3).reshape(B, S, D)
    attn = lin(o, raw["wo"], raw["bo"])
    x = ln(attn + residual, raw["ln1_g"], raw["ln1_b"])

    residual = x
    hdn = jax.nn.gelu(lin(x, raw["w1"], raw["b1"]), approximate=True)
    hdn = lin(hdn, raw["w2"], raw["b2"])
    x = ln(hdn + residual, raw["ln2_g"], raw["ln2_b"])
    return x


if __name__ == "__main__":
    MODEL_DIM = 32
    NUM_HEADS = 4
    FFN_DIM = 4 * MODEL_DIM
    BATCH, SEQ = 2, 8

    key = jax.random.PRNGKey(0)
    keys = jax.random.split(key, 13)

    def winit(k, shape, scale=0.05):
        return jax.random.normal(k, shape, dtype=jnp.float32) * scale

    raw = {
        "wqkv": winit(keys[0], (3 * MODEL_DIM, MODEL_DIM)),
        "bqkv": winit(keys[1], (3 * MODEL_DIM,), 0.02),
        "wo": winit(keys[2], (MODEL_DIM, MODEL_DIM)),
        "bo": winit(keys[3], (MODEL_DIM,), 0.02),
        "w1": winit(keys[4], (FFN_DIM, MODEL_DIM)),
        "b1": winit(keys[5], (FFN_DIM,), 0.02),
        "w2": winit(keys[6], (MODEL_DIM, FFN_DIM)),
        "b2": winit(keys[7], (MODEL_DIM,), 0.02),
        "ln1_g": 1.0 + winit(keys[8], (MODEL_DIM,), 0.1),
        "ln1_b": winit(keys[9], (MODEL_DIM,), 0.1),
        "ln2_g": 1.0 + winit(keys[10], (MODEL_DIM,), 0.1),
        "ln2_b": winit(keys[11], (MODEL_DIM,), 0.1),
    }

    # One-time parameter prep (transpose + bf16 cast + lane padding), OUTSIDE
    # the hot path.
    params = {}
    for wname, bname in (("wqkv", "bqkv"), ("wo", "bo"), ("w1", "b1"), ("w2", "b2")):
        params[wname], params[bname] = prep_linear(raw[wname], raw[bname])
    params["ln1_g"], params["ln1_b"] = prep_layernorm(
        raw["ln1_g"], raw["ln1_b"], params["wo"].shape[1])
    params["ln2_g"], params["ln2_b"] = prep_layernorm(
        raw["ln2_g"], raw["ln2_b"], params["w2"].shape[1])

    x = jax.random.normal(keys[12], (BATCH, SEQ, MODEL_DIM), dtype=jnp.float32)

    forward = make_decoder_forward(MODEL_DIM, NUM_HEADS, FFN_DIM)
    y = jax.block_until_ready(forward(x, params))

    y_ref = ref_forward(x, raw, NUM_HEADS)
    assert y.shape == (BATCH, SEQ, MODEL_DIM)
    max_err = float(jnp.max(jnp.abs(y - y_ref)))
    assert max_err < 2e-2, f"max abs err {max_err}"

    print("KERNEL_OK")
</pallas_src>

<mosaic_0001>
module attributes {stable_mosaic.version = 11 : i64} {
  func.func @kernel(%arg0: i32, %arg1: i32, %arg2: i32, %arg3: memref<16x32xf32, #tpu.memory_space<vmem>>, %arg4: memref<32x128xbf16, #tpu.memory_space<vmem>>, %arg5: memref<1x128xf32, #tpu.memory_space<vmem>>, %arg6: memref<16x128xf32, #tpu.memory_space<vmem>>) attributes {dimension_semantics = [#tpu.dimension_semantics<parallel>, #tpu.dimension_semantics<parallel>, #tpu.dimension_semantics<arbitrary>], iteration_bounds = array<i64: 1, 1, 1>, scalar_prefetch = 0 : i64, scratch_operands = 0 : i64, tpu.core_type = #tpu.core_type<tc>, window_params = [{transform_indices = @transform_0, window_bounds = array<i64: 16, 32>}, {transform_indices = @transform_1, window_bounds = array<i64: 32, 128>}, {transform_indices = @transform_2, window_bounds = array<i64: 1, 128>}, {transform_indices = @transform_3, window_bounds = array<i64: 16, 128>}]} {
    %c0 = arith.constant 0 : index
    %c0_0 = arith.constant 0 : index
    %0 = vector.load %arg3[%c0, %c0_0] : memref<16x32xf32, #tpu.memory_space<vmem>>, vector<16x32xf32>
    %1 = arith.truncf %0 : vector<16x32xf32> to vector<16x32xbf16>
    %c0_1 = arith.constant 0 : index
    %c0_2 = arith.constant 0 : index
    %2 = vector.load %arg4[%c0_1, %c0_2] : memref<32x128xbf16, #tpu.memory_space<vmem>>, vector<32x128xbf16>
    %cst = arith.constant dense<0.000000e+00> : vector<16x128xf32>
    %3 = tpu.matmul %1, %2, %cst {dimension_numbers = #tpu.dot_dimension_numbers<[1], [0], [0], [1], [0, 0, 1, 1], [], []>} : vector<16x32xbf16>, vector<32x128xbf16>, vector<16x128xf32> -> vector<16x128xf32>
    %c0_3 = arith.constant 0 : index
    %c0_4 = arith.constant 0 : index
    %4 = vector.load %arg5[%c0_3, %c0_4] : memref<1x128xf32, #tpu.memory_space<vmem>>, vector<1x128xf32>
    %5 = vector.broadcast %4 : vector<1x128xf32> to vector<16x128xf32>
    %6 = arith.addf %3, %5 : vector<16x128xf32>
    %c0_5 = arith.constant 0 : index
    %c0_6 = arith.constant 0 : index
    %7 = vector.load %arg6[%c0_5, %c0_6] : memref<16x128xf32, #tpu.memory_space<vmem>>, vector<16x128xf32>
    tpu.vector_store %arg6[%c0_5, %c0_6], %6 {strides = array<i32>} : memref<16x128xf32, #tpu.memory_space<vmem>>, vector<16x128xf32>,
    return
  }
  func.func @transform_0(%arg0: i32, %arg1: i32, %arg2: i32) -> (i32, i32) {
    %c0_i32 = arith.constant 0 : i32
    return %arg0, %arg2 : i32, i32
  }
  func.func @transform_1(%arg0: i32, %arg1: i32, %arg2: i32) -> (i32, i32) {
    %c0_i32 = arith.constant 0 : i32
    return %arg2, %arg1 : i32, i32
  }
  func.func @transform_2(%arg0: i32, %arg1: i32, %arg2: i32) -> (i32, i32) {
    %c0_i32 = arith.constant 0 : i32
    %c0_i32_0 = arith.constant 0 : i32
    return %c0_i32, %arg1 : i32, i32
  }
  func.func @transform_3(%arg0: i32, %arg1: i32, %arg2: i32) -> (i32, i32) {
    %c0_i32 = arith.constant 0 : i32
    return %arg0, %arg1 : i32, i32
  }
}

module attributes {stable_mosaic.version = 11 : i64} {
  func.func @_flash_attn_kernel(%arg0: i32, %arg1: i32, %arg2: i32, %arg3: memref<1x8x32xf32, #tpu.memory_space<vmem>>, %arg4: memref<1x8x32xf32, #tpu.memory_space<vmem>>, %arg5: memref<1x8x32xf32, #tpu.memory_space<vmem>>, %arg6: memref<1x8x32xf32, #tpu.memory_space<vmem>>, %arg7: memref<4x8x1xf32, #tpu.memory_space<vmem>>, %arg8: memref<4x8x1xf32, #tpu.memory_space<vmem>>, %arg9: memref<4x8x8xf32, #tpu.memory_space<vmem>>) attributes {dimension_semantics = [#tpu.dimension_semantics<parallel>, #tpu.dimension_semantics<parallel>, #tpu.dimension_semantics<arbitrary>], iteration_bounds = array<i64: 2, 1, 1>, scalar_prefetch = 0 : i64, scratch_operands = 3 : i64, tpu.core_type = #tpu.core_type<tc>, window_params = [{transform_indices = @transform_0, window_bounds = array<i64: 1, 8, 32>}, {transform_indices = @transform_1, window_bounds = array<i64: 1, 8, 32>}, {transform_indices = @transform_2, window_bounds = array<i64: 1, 8, 32>}, {transform_indices = @transform_3, window_bounds = array<i64: 1, 8, 32>}]} {
    %c0_i32 = arith.constant 0 : i32
    %0 = arith.cmpi eq, %arg2, %c0_i32 : i32
    %1 = arith.extui %0 : i1 to i32
    %c0_i32_0 = arith.constant 0 : i32
    %2 = arith.cmpi ne, %1, %c0_i32_0 : i32
    scf.if %2 {
      %cst = arith.constant -1.000000e+30 : f32
      %9 = vector.broadcast %cst : f32 to vector<4x8x1xf32>
      %c0 = arith.constant 0 : index
      %c0_4 = arith.constant 0 : index
      %c0_5 = arith.constant 0 : index
      %10 = vector.load %arg7[%c0, %c0_4, %c0_5] : memref<4x8x1xf32, #tpu.memory_space<vmem>>, vector<4x8x1xf32>
      tpu.vector_store %arg7[%c0, %c0_4, %c0_5], %9 {strides = array<i32>} : memref<4x8x1xf32, #tpu.memory_space<vmem>>, vector<4x8x1xf32>,
      %cst_6 = arith.constant 0.000000e+00 : f32
      %11 = vector.broadcast %cst_6 : f32 to vector<4x8x1xf32>
      %c0_7 = arith.constant 0 : index
      %c0_8 = arith.constant 0 : index
      %c0_9 = arith.constant 0 : index
      %12 = vector.load %arg8[%c0_7, %c0_8, %c0_9] : memref<4x8x1xf32, #tpu.memory_space<vmem>>, vector<4x8x1xf32>
      tpu.vector_store %arg8[%c0_7, %c0_8, %c0_9], %11 {strides = array<i32>} : memref<4x8x1xf32, #tpu.memory_space<vmem>>, vector<4x8x1xf32>,
      %cst_10 = arith.constant 0.000000e+00 : f32
      %13 = vector.broadcast %cst_10 : f32 to vector<4x8x8xf32>
      %c0_11 = arith.constant 0 : index
      %c0_12 = arith.constant 0 : index
      %c0_13 = arith.constant 0 : index
      %14 = vector.load %arg9[%c0_11, %c0_12, %c0_13] : memref<4x8x8xf32, #tpu.memory_space<vmem>>, vector<4x8x8xf32>
      tpu.vector_store %arg9[%c0_11, %c0_12, %c0_13], %13 {strides = array<i32>} : memref<4x8x8xf32, #tpu.memory_space<vmem>>, vector<4x8x8xf32>,
    } else {
    }
    %3 = arith.cmpi sle, %arg2, %arg1 : i32
    %4 = arith.extui %3 : i1 to i32
    %c0_i32_1 = arith.constant 0 : i32
    %5 = arith.cmpi ne, %4, %c0_i32_1 : i32
    scf.if %5 {
      %c0 = arith.constant 0 : index
      %c0_4 = arith.constant 0 : index
      %c0_5 = arith.constant 0 : index
      %9 = vector.load %arg3[%c0, %c0_4, %c0_5] : memref<1x8x32xf32, #tpu.memory_space<vmem>>, vector<1x8x32xf32>
      %10 = vector.shape_cast %9 : vector<1x8x32xf32> to vector<8x32xf32>
      %11 = arith.truncf %10 : vector<8x32xf32> to vector<8x32xbf16>
      %c0_6 = arith.constant 0 : index
      %c0_7 = arith.constant 0 : index
      %c0_8 = arith.constant 0 : index
      %12 = vector.load %arg4[%c0_6, %c0_7, %c0_8] : memref<1x8x32xf32, #tpu.memory_space<vmem>>, vector<1x8x32xf32>
      %13 = vector.shape_cast %12 : vector<1x8x32xf32> to vector<8x32xf32>
      %14 = arith.truncf %13 : vector<8x32xf32> to vector<8x32xbf16>
      %c0_9 = arith.constant 0 : index
      %c0_10 = arith.constant 0 : index
      %c0_11 = arith.constant 0 : index
      %15 = vector.load %arg5[%c0_9, %c0_10, %c0_11] : memref<1x8x32xf32, #tpu.memory_space<vmem>>, vector<1x8x32xf32>
      %16 = vector.shape_cast %15 : vector<1x8x32xf32> to vector<8x32xf32>
      %17 = arith.truncf %16 : vector<8x32xf32> to vector<8x32xbf16>
      %c8_i32 = arith.constant 8 : i32
      %18 = arith.muli %arg1, %c8_i32 : i32
      %19 = tpu.iota {dimensions = array<i32: 0>} : vector<8x8xi32>
      %20 = vector.broadcast %18 : i32 to vector<8x8xi32>
      %21 = arith.addi %20, %19 : vector<8x8xi32>
      %c8_i32_12 = arith.constant 8 : i32
      %22 = arith.muli %arg2, %c8_i32_12 : i32
      %23 = tpu.iota {dimensions = array<i32: 1>} : vector<8x8xi32>
      %24 = vector.broadcast %22 : i32 to vector<8x8xi32>
      %25 = arith.addi %24, %23 : vector<8x8xi32>
      %26 = arith.cmpi sle, %25, %21 : vector<8x8xi32>
      %c8_i32_13 = arith.constant 8 : i32
      %27 = vector.broadcast %c8_i32_13 : i32 to vector<8x8xi32>
      %28 = arith.cmpi slt, %25, %27 : vector<8x8xi32>
      %29 = arith.andi %26, %28 : vector<8x8xi1>
      %30 = vector.extract_strided_slice %11 {offsets = [0, 0], sizes = [8, 8], strides = [1, 1]} : vector<8x32xbf16> to vector<8x8xbf16>
      %31 = vector.extract_strided_slice %14 {offsets = [0, 0], sizes = [8, 8], strides = [1, 1]} : vector<8x32xbf16> to vector<8x8xbf16>
      %32 = vector.extract_strided_slice %17 {offsets = [0, 0], sizes = [8, 8], strides = [1, 1]} : vector<8x32xbf16> to vector<8x8xbf16>
      %cst = arith.constant dense<0.000000e+00> : vector<8x8xf32>
      %33 = tpu.matmul %30, %31, %cst {dimension_numbers = #tpu.dot_dimension_numbers<[1], [1], [0], [0], [0, 0, 1, 0], [], []>} : vector<8x8xbf16>, vector<8x8xbf16>, vector<8x8xf32> -> vector<8x8xf32>
      %cst_14 = arith.constant 0.353553385 : f32
      %34 = vector.broadcast %cst_14 : f32 to vector<8x8xf32>
      %35 = arith.mulf %33, %34 : vector<8x8xf32>
      %cst_15 = arith.constant -1.000000e+30 : f32
      %36 = vector.broadcast %cst_15 : f32 to vector<8x8xf32>
      %37 = arith.select %29, %35, %36 : vector<8x8xi1>, vector<8x8xf32>
      %c0_16 = arith.constant 0 : index
      %c0_17 = arith.constant 0 : index
      %c0_18 = arith.constant 0 : index
      %38 = vector.load %arg7[%c0_16, %c0_17, %c0_18] : memref<4x8x1xf32, #tpu.memory_space<vmem>>, vector<1x8x1xf32>
      %39 = vector.shape_cast %38 : vector<1x8x1xf32> to vector<8x1xf32>
      %cst_19 = arith.constant dense<0xFF800000> : vector<8xf32>
      %40 = vector.multi_reduction <maximumf>, %37, %cst_19 [1] : vector<8x8xf32> to vector<8xf32>
      %41 = vector.shape_cast %40 : vector<8xf32> to vector<8x1xf32>
      %42 = arith.maximumf %39, %41 : vector<8x1xf32>
      %43 = arith.subf %39, %42 : vector<8x1xf32>
      %44 = math.exp %43 : vector<8x1xf32>
      %45 = vector.broadcast %42 : vector<8x1xf32> to vector<8x8xf32>
      %46 = arith.subf %37, %45 : vector<8x8xf32>
      %47 = math.exp %46 : vector<8x8xf32>
      %c0_20 = arith.constant 0 : index
      %c0_21 = arith.constant 0 : index
      %c0_22 = arith.constant 0 : index
      %48 = vector.load %arg8[%c0_20, %c0_21, %c0_22] : memref<4x8x1xf32, #tpu.memory_space<vmem>>, vector<1x8x1xf32>
      %49 = vector.shape_cast %48 : vector<1x8x1xf32> to vector<8x1xf32>
      %50 = arith.mulf %44, %49 : vector<8x1xf32>
      %cst_23 = arith.constant dense<0.000000e+00> : vector<8xf32>
      %51 = vector.multi_reduction <add>, %47, %cst_23 [1] : vector<8x8xf32> to vector<8xf32>
      %52 = vector.shape_cast %51 : vector<8xf32> to vector<8x1xf32>
      %53 = arith.addf %50, %52 : vector<8x1xf32>
      %c0_24 = arith.constant 0 : index
      %c0_25 = arith.constant 0 : index
      %c0_26 = arith.constant 0 : index
      %54 = vector.load %arg8[%c0_24, %c0_25, %c0_26] : memref<4x8x1xf32, #tpu.memory_space<vmem>>, vector<1x8x1xf32>
      %55 = vector.shape_cast %54 : vector<1x8x1xf32> to vector<8x1xf32>
      %56 = vector.shape_cast %53 : vector<8x1xf32> to vector<1x8x1xf32>
      tpu.vector_store %arg8[%c0_24, %c0_25, %c0_26], %56 {strides = array<i32>} : memref<4x8x1xf32, #tpu.memory_space<vmem>>, vector<1x8x1xf32>,
      %c0_27 = arith.constant 0 : index
      %c0_28 = arith.constant 0 : index
      %c0_29 = arith.constant 0 : index
      %57 = vector.load %arg9[%c0_27, %c0_28, %c0_29] : memref<4x8x8xf32, #tpu.memory_space<vmem>>, vector<1x8x8xf32>
      %58 = vector.shape_cast %57 : vector<1x8x8xf32> to vector<8x8xf32>
      %59 = vector.broadcast %44 : vector<8x1xf32> to vector<8x8xf32>
      %60 = arith.mulf %59, %58 : vector<8x8xf32>
      %61 = arith.truncf %47 : vector<8x8xf32> to vector<8x8xbf16>
      %cst_30 = arith.constant dense<0.000000e+00> : vector<8x8xf32>
      %62 = tpu.matmul %61, %32, %cst_30 {dimension_numbers = #tpu.dot_dimension_numbers<[1], [0], [0], [1], [0, 0, 1, 1], [], []>} : vector<8x8xbf16>, vector<8x8xbf16>, vector<8x8xf32> -> vector<8x8xf32>
      %63 = arith.addf %60, %62 : vector<8x8xf32>
      %c0_31 = arith.constant 0 : index
      %c0_32 = arith.constant 0 : index
      %c0_33 = arith.constant 0 : index
      %64 = vector.load %arg9[%c0_31, %c0_32, %c0_33] : memref<4x8x8xf32, #tpu.memory_space<vmem>>, vector<1x8x8xf32>
      %65 = vector.shape_cast %64 : vector<1x8x8xf32> to vector<8x8xf32>
      %66 = vector.shape_cast %63 : vector<8x8xf32> to vector<1x8x8xf32>
      tpu.vector_store %arg9[%c0_31, %c0_32, %c0_33], %66 {strides = array<i32>} : memref<4x8x8xf32, #tpu.memory_space<vmem>>, vector<1x8x8xf32>,
      %c0_34 = arith.constant 0 : index
      %c0_35 = arith.constant 0 : index
      %c0_36 = arith.constant 0 : index
      %67 = vector.load %arg7[%c0_34, %c0_35, %c0_36] : memref<4x8x1xf32, #tpu.memory_space<vmem>>, vector<1x8x1xf32>
      %68 = vector.shape_cast %67 : vector<1x8x1xf32> to vector<8x1xf32>
      %69 = vector.shape_cast %42 : vector<8x1xf32> to vector<1x8x1xf32>
      tpu.vector_store %arg7[%c0_34, %c0_35, %c0_36], %69 {strides = array<i32>} : memref<4x8x1xf32, #tpu.memory_space<vmem>>, vector<1x8x1xf32>,
      %70 = vector.extract_strided_slice %11 {offsets = [0, 8], sizes = [8, 8], strides = [1, 1]} : vector<8x32xbf16> to vector<8x8xbf16>
      %71 = vector.extract_strided_slice %14 {offsets = [0, 8], sizes = [8, 8], strides = [1, 1]} : vector<8x32xbf16> to vector<8x8xbf16>
      %72 = vector.extract_strided_slice %17 {offsets = [0, 8], sizes = [8, 8], strides = [1, 1]} : vector<8x32xbf16> to vector<8x8xbf16>
      %cst_37 = arith.constant dense<0.000000e+00> : vector<8x8xf32>
      %73 = tpu.matmul %70, %71, %cst_37 {dimension_numbers = #tpu.dot_dimension_numbers<[1], [1], [0], [0], [0, 0, 1, 0], [], []>} : vector<8x8xbf16>, vector<8x8xbf16>, vector<8x8xf32> -> vector<8x8xf32>
      %cst_38 = arith.constant 0.353553385 : f32
      %74 = vector.broadcast %cst_38 : f32 to vector<8x8xf32>
      %75 = arith.mulf %73, %74 : vector<8x8xf32>
      %cst_39 = arith.constant -1.000000e+30 : f32
      %76 = vector.broadcast %cst_39 : f32 to vector<8x8xf32>
      %77 = arith.select %29, %75, %76 : vector<8x8xi1>, vector<8x8xf32>
      %c1 = arith.constant 1 : index
      %c0_40 = arith.constant 0 : index
      %c0_41 = arith.constant 0 : index
      %78 = vector.load %arg7[%c1, %c0_40, %c0_41] : memref<4x8x1xf32, #tpu.memory_space<vmem>>, vector<1x8x1xf32>
      %79 = vector.shape_cast %78 : vector<1x8x1xf32> to vector<8x1xf32>
      %cst_42 = arith.constant dense<0xFF800000> : vector<8xf32>
      %80 = vector.multi_reduction <maximumf>, %77, %cst_42 [1] : vector<8x8xf32> to vector<8xf32>
      %81 = vector.shape_cast %80 : vector<8xf32> to vector<8x1xf32>
      %82 = arith.maximumf %79, %81 : vector<8x1xf32>
      %83 = arith.subf %79, %82 : vector<8x1xf32>
      %84 = math.exp %83 : vector<8x1xf32>
      %85 = vector.broadcast %82 : vector<8x1xf32> to vector<8x8xf32>
      %86 = arith.subf %77, %85 : vector<8x8xf32>
      %87 = math.exp %86 : vector<8x8xf32>
      %c1_43 = arith.constant 1 : index
      %c0_44 = arith.constant 0 : index
      %c0_45 = arith.constant 0 : index
      %88 = vector.load %arg8[%c1_43, %c0_44, %c0_45] : memref<4x8x1xf32, #tpu.memory_space<vmem>>, vector<1x8x1xf32>
      %89 = vector.shape_cast %88 : vector<1x8x1xf32> to vector<8x1xf32>
      %90 = arith.mulf %84, %89 : vector<8x1xf32>
      %cst_46 = arith.constant dense<0.000000e+00> : vector<8xf32>
      %91 = vector.multi_reduction <add>, %87, %cst_46 [1] : vector<8x8xf32> to vector<8xf32>
      %92 = vector.shape_cast %91 : vector<8xf32> to vector<8x1xf32>
      %93 = arith.addf %90, %92 : vector<8x1xf32>
      %c1_47 = arith.constant 1 : index
      %c0_48 = arith.constant 0 : index
      %c0_49 = arith.constant 0 : index
      %94 = vector.load %arg8[%c1_47, %c0_48, %c0_49] : memref<4x8x1xf32, #tpu.memory_space<vmem>>, vector<1x8x1xf32>
      %95 = vector.shape_cast %94 : vector<1x8x1xf32> to vector<8x1xf32>
      %96 = vector.shape_cast %93 : vector<8x1xf32> to vector<1x8x1xf32>
      tpu.vector_store %arg8[%c1_47, %c0_48, %c0_49], %96 {strides = array<i32>} : memref<4x8x1xf32, #tpu.memory_space<vmem>>, vector<1x8x1xf32>,
      %c1_50 = arith.constant 1 : index
      %c0_51 = arith.constant 0 : index
      %c0_52 = arith.constant 0 : index
      %97 = vector.load %arg9[%c1_50, %c0_51, %c0_52] : memref<4x8x8xf32, #tpu.memory_space<vmem>>, vector<1x8x8xf32>
      %98 = vector.shape_cast %97 : vector<1x8x8xf32> to vector<8x8xf32>
      %99 = vector.broadcast %84 : vector<8x1xf32> to vector<8x8xf32>
      %100 = arith.mulf %99, %98 : vector<8x8xf32>
      %101 = arith.truncf %87 : vector<8x8xf32> to vector<8x8xbf16>
      %cst_53 = arith.constant dense<0.000000e+00> : vector<8x8xf32>
      %102 = tpu.matmul %101, %72, %cst_53 {dimension_numbers = #tpu.dot_dimension_numbers<[1], [0], [0], [1], [0, 0, 1, 1], [], []>} : vector<8x8xbf16>, vector<8x8xbf16>, vector<8x8xf32> -> vector<8x8xf32>
      %103 = arith.addf %100, %102 : vector<8x8xf32>
      %c1_54 = arith.constant 1 : index
      %c0_55 = arith.constant 0 : index
      %c0_56 = arith.constant 0 : index
      %104 = vector.load %arg9[%c1_54, %c0_55, %c0_56] : memref<4x8x8xf32, #tpu.memory_space<vmem>>, vector<1x8x8xf32>
      %105 = vector.shape_cast %104 : vector<1x8x8xf32> to vector<8x8xf32>
      %106 = vector.shape_cast %103 : vector<8x8xf32> to vector<1x8x8xf32>
      tpu.vector_store %arg9[%c1_54, %c0_55, %c0_56], %106 {strides = array<i32>} : memref<4x8x8xf32, #tpu.memory_space<vmem>>, vector<1x8x8xf32>,
      %c1_57 = arith.constant 1 : index
      %c0_58 = arith.constant 0 : index
      %c0_59 = arith.constant 0 : index
      %107 = vector.load %arg7[%c1_57, %c0_58, %c0_59] : memref<4x8x1xf32, #tpu.memory_space<vmem>>, vector<1x8x1xf32>
      %108 = vector.shape_cast %107 : vector<1x8x1xf32> to vector<8x1xf32>
      %109 = vector.shape_cast %82 : vector<8x1xf32> to vector<1x8x1xf32>
      tpu.vector_store %arg7[%c1_57, %c0_58, %c0_59], %109 {strides = array<i32>} : memref<4x8x1xf32, #tpu.memory_space<vmem>>, vector<1x8x1xf32>,
      %110 = vector.extract_strided_slice %11 {offsets = [0, 16], sizes = [8, 8], strides = [1, 1]} : vector<8x32xbf16> to vector<8x8xbf16>
      %111 = vector.extract_strided_slice %14 {offsets = [0, 16], sizes = [8, 8], strides = [1, 1]} : vector<8x32xbf16> to vector<8x8xbf16>
      %112 = vector.extract_strided_slice %17 {offsets = [0, 16], sizes = [8, 8], strides = [1, 1]} : vector<8x32xbf16> to vector<8x8xbf16>
      %cst_60 = arith.constant dense<0.000000e+00> : vector<8x8xf32>
      %113 = tpu.matmul %110, %111, %cst_60 {dimension_numbers = #tpu.dot_dimension_numbers<[1], [1], [0], [0], [0, 0, 1, 0], [], []>} : vector<8x8xbf16>, vector<8x8xbf16>, vector<8x8xf32> -> vector<8x8xf32>
      %cst_61 = arith.constant 0.353553385 : f32
      %114 = vector.broadcast %cst_61 : f32 to vector<8x8xf32>
      %115 = arith.mulf %113, %114 : vector<8x8xf32>
      %cst_62 = arith.constant -1.000000e+30 : f32
      %116 = vector.broadcast %cst_62 : f32 to vector<8x8xf32>
      %117 = arith.select %29, %115, %116 : vector<8x8xi1>, vector<8x8xf32>
      %c2 = arith.constant 2 : index
      %c0_63 = arith.constant 0 : index
      %c0_64 = arith.constant 0 : index
      %118 = vector.load %arg7[%c2, %c0_63, %c0_64] : memref<4x8x1xf32, #tpu.memory_space<vmem>>, vector<1x8x1xf32>
      %119 = vector.shape_cast %118 : vector<1x8x1xf32> to vector<8x1xf32>
      %cst_65 = arith.constant dense<0xFF800000> : vector<8xf32>
      %120 = vector.multi_reduction <maximumf>, %117, %cst_65 [1] : vector<8x8xf32> to vector<8xf32>
      %121 = vector.shape_cast %120 : vector<8xf32> to vector<8x1xf32>
      %122 = arith.maximumf %119, %121 : vector<8x1xf32>
      %123 = arith.subf %119, %122 : vector<8x1xf32>
      %124 = math.exp %123 : vector<8x1xf32>
      %125 = vector.broadcast %122 : vector<8x1xf32> to vector<8x8xf32>
      %126 = arith.subf %117, %125 : vector<8x8xf32>
      %127 = math.exp %126 : vector<8x8xf32>
      %c2_66 = arith.constant 2 : index
      %c0_67 = arith.constant 0 : index
      %c0_68 = arith.constant 0 : index
      %128 = vector.load %arg8[%c2_66, %c0_67, %c0_68] : memref<4x8x1xf32, #tpu.memory_space<vmem>>, vector<1x8x1xf32>
      %129 = vector.shape_cast %128 : vector<1x8x1xf32> to vector<8x1xf32>
      %130 = arith.mulf %124, %129 : vector<8x1xf32>
      %cst_69 = arith.constant dense<0.000000e+00> : vector<8xf32>
      %131 = vector.multi_reduction <add>, %127, %cst_69 [1] : vector<8x8xf32> to vector<8xf32>
      %132 = vector.shape_cast %131 : vector<8xf32> to vector<8x1xf32>
      %133 = arith.addf %130, %132 : vector<8x1xf32>
      %c2_70 = arith.constant 2 : index
      %c0_71 = arith.constant 0 : index
      %c0_72 = arith.constant 0 : index
      %134 = vector.load %arg8[%c2_70, %c0_71, %c0_72] : memref<4x8x1xf32, #tpu.memory_space<vmem>>, vector<1x8x1xf32>
      %135 = vector.shape_cast %134 : vector<1x8x1xf32> to vector<8x1xf32>
      %136 = vector.shape_cast %133 : vector<8x1xf32> to vector<1x8x1xf32>
      tpu.vector_store %arg8[%c2_70, %c0_71, %c0_72], %136 {strides = array<i32>} : memref<4x8x1xf32, #tpu.memory_space<vmem>>, vector<1x8x1xf32>,
      %c2_73 = arith.constant 2 : index
      %c0_74 = arith.constant 0 : index
      %c0_75 = arith.constant 0 : index
      %137 = vector.load %arg9[%c2_73, %c0_74, %c0_75] : memref<4x8x8xf32, #tpu.memory_space<vmem>>, vector<1x8x8xf32>
      %138 = vector.shape_cast %137 : vector<1x8x8xf32> to vector<8x8xf32>
      %139 = vector.broadcast %124 : vector<8x1xf32> to vector<8x8xf32>
      %140 = arith.mulf %139, %138 : vector<8x8xf32>
      %141 = arith.truncf %127 : vector<8x8xf32> to vector<8x8xbf16>
      %cst_76 = arith.constant dense<0.000000e+00> : vector<8x8xf32>
      %142 = tpu.matmul %141, %112, %cst_76 {dimension_numbers = #tpu.dot_dimension_numbers<[1], [0], [0], [1], [0, 0, 1, 1], [], []>} : vector<8x8xbf16>, vector<8x8xbf16>, vector<8x8xf32> -> vector<8x8xf32>
      %143 = arith.addf %140, %142 : vector<8x8xf32>
      %c2_77 = arith.constant 2 : index
      %c0_78 = arith.constant 0 : index
      %c0_79 = arith.constant 0 : index
      %144 = vector.load %arg9[%c2_77, %c0_78, %c0_79] : memref<4x8x8xf32, #tpu.memory_space<vmem>>, vector<1x8x8xf32>
      %145 = vector.shape_cast %144 : vector<1x8x8xf32> to vector<8x8xf32>
      %146 = vector.shape_cast %143 : vector<8x8xf32> to vector<1x8x8xf32>
      tpu.vector_store %arg9[%c2_77, %c0_78, %c0_79], %146 {strides = array<i32>} : memref<4x8x8xf32, #tpu.memory_space<vmem>>, vector<1x8x8xf32>,
      %c2_80 = arith.constant 2 : index
      %c0_81 = arith.constant 0 : index
      %c0_82 = arith.constant 0 : index
      %147 = vector.load %arg7[%c2_80, %c0_81, %c0_82] : memref<4x8x1xf32, #tpu.memory_space<vmem>>, vector<1x8x1xf32>
      %148 = vector.shape_cast %147 : vector<1x8x1xf32> to vector<8x1xf32>
      %149 = vector.shape_cast %122 : vector<8x1xf32> to vector<1x8x1xf32>
      tpu.vector_store %arg7[%c2_80, %c0_81, %c0_82], %149 {strides = array<i32>} : memref<4x8x1xf32, #tpu.memory_space<vmem>>, vector<1x8x1xf32>,
      %150 = vector.extract_strided_slice %11 {offsets = [0, 24], sizes = [8, 8], strides = [1, 1]} : vector<8x32xbf16> to vector<8x8xbf16>
      %151 = vector.extract_strided_slice %14 {offsets = [0, 24], sizes = [8, 8], strides = [1, 1]} : vector<8x32xbf16> to vector<8x8xbf16>
      %152 = vector.extract_strided_slice %17 {offsets = [0, 24], sizes = [8, 8], strides = [1, 1]} : vector<8x32xbf16> to vector<8x8xbf16>
      %cst_83 = arith.constant dense<0.000000e+00> : vector<8x8xf32>
      %153 = tpu.matmul %150, %151, %cst_83 {dimension_numbers = #tpu.dot_dimension_numbers<[1], [1], [0], [0], [0, 0, 1, 0], [], []>} : vector<8x8xbf16>, vector<8x8xbf16>, vector<8x8xf32> -> vector<8x8xf32>
      %cst_84 = arith.constant 0.353553385 : f32
      %154 = vector.broadcast %cst_84 : f32 to vector<8x8xf32>
      %155 = arith.mulf %153, %154 : vector<8x8xf32>
      %cst_85 = arith.constant -1.000000e+30 : f32
      %156 = vector.broadcast %cst_85 : f32 to vector<8x8xf32>
      %157 = arith.select %29, %155, %156 : vector<8x8xi1>, vector<8x8xf32>
      %c3 = arith.constant 3 : index
      %c0_86 = arith.constant 0 : index
      %c0_87 = arith.constant 0 : index
      %158 = vector.load %arg7[%c3, %c0_86, %c0_87] : memref<4x8x1xf32, #tpu.memory_space<vmem>>, vector<1x8x1xf32>
      %159 = vector.shape_cast %158 : vector<1x8x1xf32> to vector<8x1xf32>
      %cst_88 = arith.constant dense<0xFF800000> : vector<8xf32>
      %160 = vector.multi_reduction <maximumf>, %157, %cst_88 [1] : vector<8x8xf32> to vector<8xf32>
      %161 = vector.shape_cast %160 : vector<8xf32> to vector<8x1xf32>
      %162 = arith.maximumf %159, %161 : vector<8x1xf32>
      %163 = arith.subf %159, %162 : vector<8x1xf32>
      %164 = math.exp %163 : vector<8x1xf32>
      %165 = vector.broadcast %162 : vector<8x1xf32> to vector<8x8xf32>
      %166 = arith.subf %157, %165 : vector<8x8xf32>
      %167 = math.exp %166 : vector<8x8xf32>
      %c3_89 = arith.constant 3 : index
      %c0_90 = arith.constant 0 : index
      %c0_91 = arith.constant 0 : index
      %168 = vector.load %arg8[%c3_89, %c0_90, %c0_91] : memref<4x8x1xf32, #tpu.memory_space<vmem>>, vector<1x8x1xf32>
      %169 = vector.shape_cast %168 : vector<1x8x1xf32> to vector<8x1xf32>
      %170 = arith.mulf %164, %169 : vector<8x1xf32>
      %cst_92 = arith.constant dense<0.000000e+00> : vector<8xf32>
      %171 = vector.multi_reduction <add>, %167, %cst_92 [1] : vector<8x8xf32> to vector<8xf32>
      %172 = vector.shape_cast %171 : vector<8xf32> to vector<8x1xf32>
      %173 = arith.addf %170, %172 : vector<8x1xf32>
      %c3_93 = arith.constant 3 : index
      %c0_94 = arith.constant 0 : index
      %c0_95 = arith.constant 0 : index
      %174 = vector.load %arg8[%c3_93, %c0_94, %c0_95] : memref<4x8x1xf32, #tpu.memory_space<vmem>>, vector<1x8x1xf32>
      %175 = vector.shape_cast %174 : vector<1x8x1xf32> to vector<8x1xf32>
      %176 = vector.shape_cast %173 : vector<8x1xf32> to vector<1x8x1xf32>
      tpu.vector_store %arg8[%c3_93, %c0_94, %c0_95], %176 {strides = array<i32>} : memref<4x8x1xf32, #tpu.memory_space<vmem>>, vector<1x8x1xf32>,
      %c3_96 = arith.constant 3 : index
      %c0_97 = arith.constant 0 : index
      %c0_98 = arith.constant 0 : index
      %177 = vector.load %arg9[%c3_96, %c0_97, %c0_98] : memref<4x8x8xf32, #tpu.memory_space<vmem>>, vector<1x8x8xf32>
      %178 = vector.shape_cast %177 : vector<1x8x8xf32> to vector<8x8xf32>
      %179 = vector.broadcast %164 : vector<8x1xf32> to vector<8x8xf32>
      %180 = arith.mulf %179, %178 : vector<8x8xf32>
      %181 = arith.truncf %167 : vector<8x8xf32> to vector<8x8xbf16>
      %cst_99 = arith.constant dense<0.000000e+00> : vector<8x8xf32>
      %182 = tpu.matmul %181, %152, %cst_99 {dimension_numbers = #tpu.dot_dimension_numbers<[1], [0], [0], [1], [0, 0, 1, 1], [], []>} : vector<8x8xbf16>, vector<8x8xbf16>, vector<8x8xf32> -> vector<8x8xf32>
      %183 = arith.addf %180, %182 : vector<8x8xf32>
      %c3_100 = arith.constant 3 : index
      %c0_101 = arith.constant 0 : index
      %c0_102 = arith.constant 0 : index
      %184 = vector.load %arg9[%c3_100, %c0_101, %c0_102] : memref<4x8x8xf32, #tpu.memory_space<vmem>>, vector<1x8x8xf32>
      %185 = vector.shape_cast %184 : vector<1x8x8xf32> to vector<8x8xf32>
      %186 = vector.shape_cast %183 : vector<8x8xf32> to vector<1x8x8xf32>
      tpu.vector_store %arg9[%c3_100, %c0_101, %c0_102], %186 {strides = array<i32>} : memref<4x8x8xf32, #tpu.memory_space<vmem>>, vector<1x8x8xf32>,
      %c3_103 = arith.constant 3 : index
      %c0_104 = arith.constant 0 : index
      %c0_105 = arith.constant 0 : index
      %187 = vector.load %arg7[%c3_103, %c0_104, %c0_105] : memref<4x8x1xf32, #tpu.memory_space<vmem>>, vector<1x8x1xf32>
      %188 = vector.shape_cast %187 : vector<1x8x1xf32> to vector<8x1xf32>
      %189 = vector.shape_cast %162 : vector<8x1xf32> to vector<1x8x1xf32>
      tpu.vector_store %arg7[%c3_103, %c0_104, %c0_105], %189 {strides = array<i32>} : memref<4x8x1xf32, #tpu.memory_space<vmem>>, vector<1x8x1xf32>,
    } else {
    }
    %c0_i32_2 = arith.constant 0 : i32
    %6 = arith.cmpi eq, %arg2, %c0_i32_2 : i32
    %7 = arith.extui %6 : i1 to i32
    %c0_i32_3 = arith.constant 0 : i32
    %8 = arith.cmpi ne, %7, %c0_i32_3 : i32
    scf.if %8 {
      %c0 = arith.constant 0 : index
      %c0_4 = arith.constant 0 : index
      %c0_5 = arith.constant 0 : index
      %9 = vector.load %arg8[%c0, %c0_4, %c0_5] : memref<4x8x1xf32, #tpu.memory_space<vmem>>, vector<1x8x1xf32>
      %10 = vector.shape_cast %9 : vector<1x8x1xf32> to vector<8x1xf32>
      %11 = tpu.reciprocal %10 {approx = true} : vector<8x1xf32> -> vector<8x1xf32>
      %c0_6 = arith.constant 0 : index
      %c0_7 = arith.constant 0 : index
      %c0_8 = arith.constant 0 : index
      %12 = vector.load %arg9[%c0_6, %c0_7, %c0_8] : memref<4x8x8xf32, #tpu.memory_space<vmem>>, vector<1x8x8xf32>
      %13 = vector.shape_cast %12 : vector<1x8x8xf32> to vector<8x8xf32>
      %14 = vector.broadcast %11 : vector<8x1xf32> to vector<8x8xf32>
      %15 = arith.mulf %13, %14 : vector<8x8xf32>
      %c0_9 = arith.constant 0 : index
      %c0_10 = arith.constant 0 : index
      %c0_11 = arith.constant 0 : index
      %16 = vector.load %arg6[%c0_9, %c0_10, %c0_11] : memref<1x8x32xf32, #tpu.memory_space<vmem>>, vector<1x8x8xf32>
      %17 = vector.shape_cast %16 : vector<1x8x8xf32> to vector<8x8xf32>
      %18 = vector.shape_cast %15 : vector<8x8xf32> to vector<1x8x8xf32>
      tpu.vector_store %arg6[%c0_9, %c0_10, %c0_11], %18 {strides = array<i32>} : memref<1x8x32xf32, #tpu.memory_space<vmem>>, vector<1x8x8xf32>,
      %c1 = arith.constant 1 : index
      %c0_12 = arith.constant 0 : index
      %c0_13 = arith.constant 0 : index
      %19 = vector.load %arg8[%c1, %c0_12, %c0_13] : memref<4x8x1xf32, #tpu.memory_space<vmem>>, vector<1x8x1xf32>
      %20 = vector.shape_cast %19 : vector<1x8x1xf32> to vector<8x1xf32>
      %21 = tpu.reciprocal %20 {approx = true} : vector<8x1xf32> -> vector<8x1xf32>
      %c1_14 = arith.constant 1 : index
      %c0_15 = arith.constant 0 : index
      %c0_16 = arith.constant 0 : index
      %22 = vector.load %arg9[%c1_14, %c0_15, %c0_16] : memref<4x8x8xf32, #tpu.memory_space<vmem>>, vector<1x8x8xf32>
      %23 = vector.shape_cast %22 : vector<1x8x8xf32> to vector<8x8xf32>
      %24 = vector.broadcast %21 : vector<8x1xf32> to vector<8x8xf32>
      %25 = arith.mulf %23, %24 : vector<8x8xf32>
      %c0_17 = arith.constant 0 : index
      %c0_18 = arith.constant 0 : index
      %c8 = arith.constant 8 : index
      %26 = vector.load %arg6[%c0_17, %c0_18, %c8] : memref<1x8x32xf32, #tpu.memory_space<vmem>>, vector<1x8x8xf32>
      %27 = vector.shape_cast %26 : vector<1x8x8xf32> to vector<8x8xf32>
      %28 = vector.shape_cast %25 : vector<8x8xf32> to vector<1x8x8xf32>
      tpu.vector_store %arg6[%c0_17, %c0_18, %c8], %28 {strides = array<i32>} : memref<1x8x32xf32, #tpu.memory_space<vmem>>, vector<1x8x8xf32>,
      %c2 = arith.constant 2 : index
      %c0_19 = arith.constant 0 : index
      %c0_20 = arith.constant 0 : index
      %29 = vector.load %arg8[%c2, %c0_19, %c0_20] : memref<4x8x1xf32, #tpu.memory_space<vmem>>, vector<1x8x1xf32>
      %30 = vector.shape_cast %29 : vector<1x8x1xf32> to vector<8x1xf32>
      %31 = tpu.reciprocal %30 {approx = true} : vector<8x1xf32> -> vector<8x1xf32>
      %c2_21 = arith.constant 2 : index
      %c0_22 = arith.constant 0 : index
      %c0_23 = arith.constant 0 : index
      %32 = vector.load %arg9[%c2_21, %c0_22, %c0_23] : memref<4x8x8xf32, #tpu.memory_space<vmem>>, vector<1x8x8xf32>
      %33 = vector.shape_cast %32 : vector<1x8x8xf32> to vector<8x8xf32>
      %34 = vector.broadcast %31 : vector<8x1xf32> to vector<8x8xf32>
      %35 = arith.mulf %33, %34 : vector<8x8xf32>
      %c0_24 = arith.constant 0 : index
      %c0_25 = arith.constant 0 : index
      %c16 = arith.constant 16 : index
      %36 = vector.load %arg6[%c0_24, %c0_25, %c16] : memref<1x8x32xf32, #tpu.memory_space<vmem>>, vector<1x8x8xf32>
      %37 = vector.shape_cast %36 : vector<1x8x8xf32> to vector<8x8xf32>
      %38 = vector.shape_cast %35 : vector<8x8xf32> to vector<1x8x8xf32>
      tpu.vector_store %arg6[%c0_24, %c0_25, %c16], %38 {strides = array<i32>} : memref<1x8x32xf32, #tpu.memory_space<vmem>>, vector<1x8x8xf32>,
      %c3 = arith.constant 3 : index
      %c0_26 = arith.constant 0 : index
      %c0_27 = arith.constant 0 : index
      %39 = vector.load %arg8[%c3, %c0_26, %c0_27] : memref<4x8x1xf32, #tpu.memory_space<vmem>>, vector<1x8x1xf32>
      %40 = vector.shape_cast %39 : vector<1x8x1xf32> to vector<8x1xf32>
      %41 = tpu.reciprocal %40 {approx = true} : vector<8x1xf32> -> vector<8x1xf32>
      %c3_28 = arith.constant 3 : index
      %c0_29 = arith.constant 0 : index
      %c0_30 = arith.constant 0 : index
      %42 = vector.load %arg9[%c3_28, %c0_29, %c0_30] : memref<4x8x8xf32, #tpu.memory_space<vmem>>, vector<1x8x8xf32>
      %43 = vector.shape_cast %42 : vector<1x8x8xf32> to vector<8x8xf32>
      %44 = vector.broadcast %41 : vector<8x1xf32> to vector<8x8xf32>
      %45 = arith.mulf %43, %44 : vector<8x8xf32>
      %c0_31 = arith.constant 0 : index
      %c0_32 = arith.constant 0 : index
      %c24 = arith.constant 24 : index
      %46 = vector.load %arg6[%c0_31, %c0_32, %c24] : memref<1x8x32xf32, #tpu.memory_space<vmem>>, vector<1x8x8xf32>
      %47 = vector.shape_cast %46 : vector<1x8x8xf32> to vector<8x8xf32>
      %48 = vector.shape_cast %45 : vector<8x8xf32> to vector<1x8x8xf32>
      tpu.vector_store %arg6[%c0_31, %c0_32, %c24], %48 {strides = array<i32>} : memref<1x8x32xf32, #tpu.memory_space<vmem>>, vector<1x8x8xf32>,
    } else {
    }
    return
  }
  func.func @transform_0(%arg0: i32, %arg1: i32, %arg2: i32) -> (i32, i32, i32) {
    %c0_i32 = arith.constant 0 : i32
    %c0_i32_0 = arith.constant 0 : i32
    return %arg0, %arg1, %c0_i32 : i32, i32, i32
  }
  func.func @transform_1(%arg0: i32, %arg1: i32, %arg2: i32) -> (i32, i32, i32) {
    %0 = arith.minsi %arg2, %arg1 : i32
    %c0_i32 = arith.constant 0 : i32
    %c0_i32_0 = arith.constant 0 : i32
    return %arg0, %0, %c0_i32 : i32, i32, i32
  }
  func.func @transform_2(%arg0: i32, %arg1: i32, %arg2: i32) -> (i32, i32, i32) {
    %0 = arith.minsi %arg2, %arg1 : i32
    %c0_i32 = arith.constant 0 : i32
    %c0_i32_0 = arith.constant 0 : i32
    return %arg0, %0, %c0_i32 : i32, i32, i32
  }
  func.func @transform_3(%arg0: i32, %arg1: i32, %arg2: i32) -> (i32, i32, i32) {
    %c0_i32 = arith.constant 0 : i32
    %c0_i32_0 = arith.constant 0 : i32
    return %arg0, %arg1, %c0_i32 : i32, i32, i32
  }
}

module attributes {stable_mosaic.version = 11 : i64} {
  func.func @kernel(%arg0: i32, %arg1: i32, %arg2: i32, %arg3: memref<16x32xf32, #tpu.memory_space<vmem>>, %arg4: memref<32x128xbf16, #tpu.memory_space<vmem>>, %arg5: memref<1x128xf32, #tpu.memory_space<vmem>>, %arg6: memref<16x128xf32, #tpu.memory_space<vmem>>) attributes {dimension_semantics = [#tpu.dimension_semantics<parallel>, #tpu.dimension_semantics<parallel>, #tpu.dimension_semantics<arbitrary>], iteration_bounds = array<i64: 1, 1, 1>, scalar_prefetch = 0 : i64, scratch_operands = 0 : i64, tpu.core_type = #tpu.core_type<tc>, window_params = [{transform_indices = @transform_0, window_bounds = array<i64: 16, 32>}, {transform_indices = @transform_1, window_bounds = array<i64: 32, 128>}, {transform_indices = @transform_2, window_bounds = array<i64: 1, 128>}, {transform_indices = @transform_3, window_bounds = array<i64: 16, 128>}]} {
    %c0 = arith.constant 0 : index
    %c0_0 = arith.constant 0 : index
    %0 = vector.load %arg3[%c0, %c0_0] : memref<16x32xf32, #tpu.memory_space<vmem>>, vector<16x32xf32>
    %1 = arith.truncf %0 : vector<16x32xf32> to vector<16x32xbf16>
    %c0_1 = arith.constant 0 : index
    %c0_2 = arith.constant 0 : index
    %2 = vector.load %arg4[%c0_1, %c0_2] : memref<32x128xbf16, #tpu.memory_space<vmem>>, vector<32x128xbf16>
    %cst = arith.constant dense<0.000000e+00> : vector<16x128xf32>
    %3 = tpu.matmul %1, %2, %cst {dimension_numbers = #tpu.dot_dimension_numbers<[1], [0], [0], [1], [0, 0, 1, 1], [], []>} : vector<16x32xbf16>, vector<32x128xbf16>, vector<16x128xf32> -> vector<16x128xf32>
    %c0_3 = arith.constant 0 : index
    %c0_4 = arith.constant 0 : index
    %4 = vector.load %arg5[%c0_3, %c0_4] : memref<1x128xf32, #tpu.memory_space<vmem>>, vector<1x128xf32>
    %5 = vector.broadcast %4 : vector<1x128xf32> to vector<16x128xf32>
    %6 = arith.addf %3, %5 : vector<16x128xf32>
    %7 = arith.mulf %6, %6 : vector<16x128xf32>
    %8 = arith.mulf %6, %7 : vector<16x128xf32>
    %cst_5 = arith.constant 4.471500e-02 : f32
    %9 = vector.broadcast %cst_5 : f32 to vector<16x128xf32>
    %10 = arith.mulf %9, %8 : vector<16x128xf32>
    %11 = arith.addf %6, %10 : vector<16x128xf32>
    %cst_6 = arith.constant 0.797884583 : f32
    %12 = vector.broadcast %cst_6 : f32 to vector<16x128xf32>
    %13 = arith.mulf %12, %11 : vector<16x128xf32>
    %14 = math.tanh %13 : vector<16x128xf32>
    %cst_7 = arith.constant 1.000000e+00 : f32
    %15 = vector.broadcast %cst_7 : f32 to vector<16x128xf32>
    %16 = arith.addf %15, %14 : vector<16x128xf32>
    %cst_8 = arith.constant 5.000000e-01 : f32
    %17 = vector.broadcast %cst_8 : f32 to vector<16x128xf32>
    %18 = arith.mulf %17, %16 : vector<16x128xf32>
    %19 = arith.mulf %6, %18 : vector<16x128xf32>
    %c0_9 = arith.constant 0 : index
    %c0_10 = arith.constant 0 : index
    %20 = vector.load %arg6[%c0_9, %c0_10] : memref<16x128xf32, #tpu.memory_space<vmem>>, vector<16x128xf32>
    tpu.vector_store %arg6[%c0_9, %c0_10], %19 {strides = array<i32>} : memref<16x128xf32, #tpu.memory_space<vmem>>, vector<16x128xf32>,
    return
  }
  func.func @transform_0(%arg0: i32, %arg1: i32, %arg2: i32) -> (i32, i32) {
    %c0_i32 = arith.constant 0 : i32
    return %arg0, %arg2 : i32, i32
  }
  func.func @transform_1(%arg0: i32, %arg1: i32, %arg2: i32) -> (i32, i32) {
    %c0_i32 = arith.constant 0 : i32
    return %arg2, %arg1 : i32, i32
  }
  func.func @transform_2(%arg0: i32, %arg1: i32, %arg2: i32) -> (i32, i32) {
    %c0_i32 = arith.constant 0 : i32
    %c0_i32_0 = arith.constant 0 : i32
    return %c0_i32, %arg1 : i32, i32
  }
  func.func @transform_3(%arg0: i32, %arg1: i32, %arg2: i32) -> (i32, i32) {
    %c0_i32 = arith.constant 0 : i32
    return %arg0, %arg1 : i32, i32
  }
}

module attributes {stable_mosaic.version = 11 : i64} {
  func.func @kernel(%arg0: i32, %arg1: i32, %arg2: i32, %arg3: memref<16x32xf32, #tpu.memory_space<vmem>>, %arg4: memref<32x128xbf16, #tpu.memory_space<vmem>>, %arg5: memref<1x128xf32, #tpu.memory_space<vmem>>, %arg6: memref<16x128xf32, #tpu.memory_space<vmem>>, %arg7: memref<1x128xf32, #tpu.memory_space<vmem>>, %arg8: memref<1x128xf32, #tpu.memory_space<vmem>>, %arg9: memref<16x128xf32, #tpu.memory_space<vmem>>) attributes {dimension_semantics = [#tpu.dimension_semantics<parallel>, #tpu.dimension_semantics<parallel>, #tpu.dimension_semantics<arbitrary>], iteration_bounds = array<i64: 1, 1, 1>, scalar_prefetch = 0 : i64, scratch_operands = 0 : i64, tpu.core_type = #tpu.core_type<tc>, window_params = [{transform_indices = @transform_0, window_bounds = array<i64: 16, 32>}, {transform_indices = @transform_1, window_bounds = array<i64: 32, 128>}, {transform_indices = @transform_2, window_bounds = array<i64: 1, 128>}, {transform_indices = @transform_3, window_bounds = array<i64: 16, 128>}, {transform_indices = @transform_4, window_bounds = array<i64: 1, 128>}, {transform_indices = @transform_5, window_bounds = array<i64: 1, 128>}, {transform_indices = @transform_6, window_bounds = array<i64: 16, 128>}]} {
    %c0 = arith.constant 0 : index
    %c0_0 = arith.constant 0 : index
    %0 = vector.load %arg3[%c0, %c0_0] : memref<16x32xf32, #tpu.memory_space<vmem>>, vector<16x32xf32>
    %1 = arith.truncf %0 : vector<16x32xf32> to vector<16x32xbf16>
    %c0_1 = arith.constant 0 : index
    %c0_2 = arith.constant 0 : index
    %2 = vector.load %arg4[%c0_1, %c0_2] : memref<32x128xbf16, #tpu.memory_space<vmem>>, vector<32x128xbf16>
    %cst = arith.constant dense<0.000000e+00> : vector<16x128xf32>
    %3 = tpu.matmul %1, %2, %cst {dimension_numbers = #tpu.dot_dimension_numbers<[1], [0], [0], [1], [0, 0, 1, 1], [], []>} : vector<16x32xbf16>, vector<32x128xbf16>, vector<16x128xf32> -> vector<16x128xf32>
    %c0_3 = arith.constant 0 : index
    %c0_4 = arith.constant 0 : index
    %4 = vector.load %arg5[%c0_3, %c0_4] : memref<1x128xf32, #tpu.memory_space<vmem>>, vector<1x128xf32>
    %c0_5 = arith.constant 0 : index
    %c0_6 = arith.constant 0 : index
    %5 = vector.load %arg6[%c0_5, %c0_6] : memref<16x128xf32, #tpu.memory_space<vmem>>, vector<16x128xf32>
    %c0_7 = arith.constant 0 : index
    %c0_8 = arith.constant 0 : index
    %6 = vector.load %arg7[%c0_7, %c0_8] : memref<1x128xf32, #tpu.memory_space<vmem>>, vector<1x128xf32>
    %c0_9 = arith.constant 0 : index
    %c0_10 = arith.constant 0 : index
    %7 = vector.load %arg8[%c0_9, %c0_10] : memref<1x128xf32, #tpu.memory_space<vmem>>, vector<1x128xf32>
    %8 = vector.broadcast %4 : vector<1x128xf32> to vector<16x128xf32>
    %9 = arith.addf %3, %8 : vector<16x128xf32>
    %10 = arith.addf %9, %5 : vector<16x128xf32>
    %11 = tpu.iota {dimensions = array<i32: 1>} : vector<16x128xi32>
    %c32_i32 = arith.constant 32 : i32
    %12 = vector.broadcast %c32_i32 : i32 to vector<16x128xi32>
    %13 = arith.cmpi slt, %11, %12 : vector<16x128xi32>
    %cst_11 = arith.constant 0.000000e+00 : f32
    %14 = vector.broadcast %cst_11 : f32 to vector<16x128xf32>
    %15 = arith.select %13, %10, %14 : vector<16x128xi1>, vector<16x128xf32>
    %cst_12 = arith.constant dense<0.000000e+00> : vector<16xf32>
    %16 = vector.multi_reduction <add>, %15, %cst_12 [1] : vector<16x128xf32> to vector<16xf32>
    %17 = vector.shape_cast %16 : vector<16xf32> to vector<16x1xf32>
    %cst_13 = arith.constant 3.125000e-02 : f32
    %18 = vector.broadcast %cst_13 : f32 to vector<16x1xf32>
    %19 = arith.mulf %17, %18 : vector<16x1xf32>
    %20 = vector.broadcast %19 : vector<16x1xf32> to vector<16x128xf32>
    %21 = arith.subf %10, %20 : vector<16x128xf32>
    %cst_14 = arith.constant 0.000000e+00 : f32
    %22 = vector.broadcast %cst_14 : f32 to vector<16x128xf32>
    %23 = arith.select %13, %21, %22 : vector<16x128xi1>, vector<16x128xf32>
    %24 = arith.mulf %23, %23 : vector<16x128xf32>
    %cst_15 = arith.constant dense<0.000000e+00> : vector<16xf32>
    %25 = vector.multi_reduction <add>, %24, %cst_15 [1] : vector<16x128xf32> to vector<16xf32>
    %26 = vector.shape_cast %25 : vector<16xf32> to vector<16x1xf32>
    %cst_16 = arith.constant 3.125000e-02 : f32
    %27 = vector.broadcast %cst_16 : f32 to vector<16x1xf32>
    %28 = arith.mulf %26, %27 : vector<16x1xf32>
    %cst_17 = arith.constant 9.99999974E-6 : f32
    %29 = vector.broadcast %cst_17 : f32 to vector<16x1xf32>
    %30 = arith.addf %28, %29 : vector<16x1xf32>
    %31 = math.rsqrt %30 : vector<16x1xf32>
    %32 = vector.broadcast %31 : vector<16x1xf32> to vector<16x128xf32>
    %33 = arith.mulf %23, %32 : vector<16x128xf32>
    %34 = vector.broadcast %6 : vector<1x128xf32> to vector<16x128xf32>
    %35 = arith.mulf %33, %34 : vector<16x128xf32>
    %36 = vector.broadcast %7 : vector<1x128xf32> to vector<16x128xf32>
    %37 = arith.addf %35, %36 : vector<16x128xf32>
    %c0_18 = arith.constant 0 : index
    %c0_19 = arith.constant 0 : index
    %38 = vector.load %arg9[%c0_18, %c0_19] : memref<16x128xf32, #tpu.memory_space<vmem>>, vector<16x128xf32>
    tpu.vector_store %arg9[%c0_18, %c0_19], %37 {strides = array<i32>} : memref<16x128xf32, #tpu.memory_space<vmem>>, vector<16x128xf32>,
    return
  }
  func.func @transform_0(%arg0: i32, %arg1: i32, %arg2: i32) -> (i32, i32) {
    %c0_i32 = arith.constant 0 : i32
    return %arg0, %arg2 : i32, i32
  }
  func.func @transform_1(%arg0: i32, %arg1: i32, %arg2: i32) -> (i32, i32) {
    %c0_i32 = arith.constant 0 : i32
    return %arg2, %arg1 : i32, i32
  }
  func.func @transform_2(%arg0: i32, %arg1: i32, %arg2: i32) -> (i32, i32) {
    %c0_i32 = arith.constant 0 : i32
    %c0_i32_0 = arith.constant 0 : i32
    return %c0_i32, %arg1 : i32, i32
  }
  func.func @transform_3(%arg0: i32, %arg1: i32, %arg2: i32) -> (i32, i32) {
    %c0_i32 = arith.constant 0 : i32
    return %arg0, %arg1 : i32, i32
  }
  func.func @transform_4(%arg0: i32, %arg1: i32, %arg2: i32) -> (i32, i32) {
    %c0_i32 = arith.constant 0 : i32
    %c0_i32_0 = arith.constant 0 : i32
    return %c0_i32, %arg1 : i32, i32
  }
  func.func @transform_5(%arg0: i32, %arg1: i32, %arg2: i32) -> (i32, i32) {
    %c0_i32 = arith.constant 0 : i32
    %c0_i32_0 = arith.constant 0 : i32
    return %c0_i32, %arg1 : i32, i32
  }
  func.func @transform_6(%arg0: i32, %arg1: i32, %arg2: i32) -> (i32, i32) {
    %c0_i32 = arith.constant 0 : i32
    return %arg0, %arg1 : i32, i32
  }
}

module attributes {stable_mosaic.version = 11 : i64} {
  func.func @kernel(%arg0: i32, %arg1: i32, %arg2: i32, %arg3: memref<16x128xf32, #tpu.memory_space<vmem>>, %arg4: memref<128x128xbf16, #tpu.memory_space<vmem>>, %arg5: memref<1x128xf32, #tpu.memory_space<vmem>>, %arg6: memref<16x128xf32, #tpu.memory_space<vmem>>, %arg7: memref<1x128xf32, #tpu.memory_space<vmem>>, %arg8: memref<1x128xf32, #tpu.memory_space<vmem>>, %arg9: memref<16x128xf32, #tpu.memory_space<vmem>>) attributes {dimension_semantics = [#tpu.dimension_semantics<parallel>, #tpu.dimension_semantics<parallel>, #tpu.dimension_semantics<arbitrary>], iteration_bounds = array<i64: 1, 1, 1>, scalar_prefetch = 0 : i64, scratch_operands = 0 : i64, tpu.core_type = #tpu.core_type<tc>, window_params = [{transform_indices = @transform_0, window_bounds = array<i64: 16, 128>}, {transform_indices = @transform_1, window_bounds = array<i64: 128, 128>}, {transform_indices = @transform_2, window_bounds = array<i64: 1, 128>}, {transform_indices = @transform_3, window_bounds = array<i64: 16, 128>}, {transform_indices = @transform_4, window_bounds = array<i64: 1, 128>}, {transform_indices = @transform_5, window_bounds = array<i64: 1, 128>}, {transform_indices = @transform_6, window_bounds = array<i64: 16, 128>}]} {
    %c0 = arith.constant 0 : index
    %c0_0 = arith.constant 0 : index
    %0 = vector.load %arg3[%c0, %c0_0] : memref<16x128xf32, #tpu.memory_space<vmem>>, vector<16x128xf32>
    %1 = arith.truncf %0 : vector<16x128xf32> to vector<16x128xbf16>
    %c0_1 = arith.constant 0 : index
    %c0_2 = arith.constant 0 : index
    %2 = vector.load %arg4[%c0_1, %c0_2] : memref<128x128xbf16, #tpu.memory_space<vmem>>, vector<128x128xbf16>
    %cst = arith.constant dense<0.000000e+00> : vector<16x128xf32>
    %3 = tpu.matmul %1, %2, %cst {dimension_numbers = #tpu.dot_dimension_numbers<[1], [0], [0], [1], [0, 0, 1, 1], [], []>} : vector<16x128xbf16>, vector<128x128xbf16>, vector<16x128xf32> -> vector<16x128xf32>
    %c0_3 = arith.constant 0 : index
    %c0_4 = arith.constant 0 : index
    %4 = vector.load %arg5[%c0_3, %c0_4] : memref<1x128xf32, #tpu.memory_space<vmem>>, vector<1x128xf32>
    %c0_5 = arith.constant 0 : index
    %c0_6 = arith.constant 0 : index
    %5 = vector.load %arg6[%c0_5, %c0_6] : memref<16x128xf32, #tpu.memory_space<vmem>>, vector<16x128xf32>
    %c0_7 = arith.constant 0 : index
    %c0_8 = arith.constant 0 : index
    %6 = vector.load %arg7[%c0_7, %c0_8] : memref<1x128xf32, #tpu.memory_space<vmem>>, vector<1x128xf32>
    %c0_9 = arith.constant 0 : index
    %c0_10 = arith.constant 0 : index
    %7 = vector.load %arg8[%c0_9, %c0_10] : memref<1x128xf32, #tpu.memory_space<vmem>>, vector<1x128xf32>
    %8 = vector.broadcast %4 : vector<1x128xf32> to vector<16x128xf32>
    %9 = arith.addf %3, %8 : vector<16x128xf32>
    %10 = arith.addf %9, %5 : vector<16x128xf32>
    %11 = tpu.iota {dimensions = array<i32: 1>} : vector<16x128xi32>
    %c32_i32 = arith.constant 32 : i32
    %12 = vector.broadcast %c32_i32 : i32 to vector<16x128xi32>
    %13 = arith.cmpi slt, %11, %12 : vector<16x128xi32>
    %cst_11 = arith.constant 0.000000e+00 : f32
    %14 = vector.broadcast %cst_11 : f32 to vector<16x128xf32>
    %15 = arith.select %13, %10, %14 : vector<16x128xi1>, vector<16x128xf32>
    %cst_12 = arith.constant dense<0.000000e+00> : vector<16xf32>
    %16 = vector.multi_reduction <add>, %15, %cst_12 [1] : vector<16x128xf32> to vector<16xf32>
    %17 = vector.shape_cast %16 : vector<16xf32> to vector<16x1xf32>
    %cst_13 = arith.constant 3.125000e-02 : f32
    %18 = vector.broadcast %cst_13 : f32 to vector<16x1xf32>
    %19 = arith.mulf %17, %18 : vector<16x1xf32>
    %20 = vector.broadcast %19 : vector<16x1xf32> to vector<16x128xf32>
    %21 = arith.subf %10, %20 : vector<16x128xf32>
    %cst_14 = arith.constant 0.000000e+00 : f32
    %22 = vector.broadcast %cst_14 : f32 to vector<16x128xf32>
    %23 = arith.select %13, %21, %22 : vector<16x128xi1>, vector<16x128xf32>
    %24 = arith.mulf %23, %23 : vector<16x128xf32>
    %cst_15 = arith.constant dense<0.000000e+00> : vector<16xf32>
    %25 = vector.multi_reduction <add>, %24, %cst_15 [1] : vector<16x128xf32> to vector<16xf32>
    %26 = vector.shape_cast %25 : vector<16xf32> to vector<16x1xf32>
    %cst_16 = arith.constant 3.125000e-02 : f32
    %27 = vector.broadcast %cst_16 : f32 to vector<16x1xf32>
    %28 = arith.mulf %26, %27 : vector<16x1xf32>
    %cst_17 = arith.constant 9.99999974E-6 : f32
    %29 = vector.broadcast %cst_17 : f32 to vector<16x1xf32>
    %30 = arith.addf %28, %29 : vector<16x1xf32>
    %31 = math.rsqrt %30 : vector<16x1xf32>
    %32 = vector.broadcast %31 : vector<16x1xf32> to vector<16x128xf32>
    %33 = arith.mulf %23, %32 : vector<16x128xf32>
    %34 = vector.broadcast %6 : vector<1x128xf32> to vector<16x128xf32>
    %35 = arith.mulf %33, %34 : vector<16x128xf32>
    %36 = vector.broadcast %7 : vector<1x128xf32> to vector<16x128xf32>
    %37 = arith.addf %35, %36 : vector<16x128xf32>
    %c0_18 = arith.constant 0 : index
    %c0_19 = arith.constant 0 : index
    %38 = vector.load %arg9[%c0_18, %c0_19] : memref<16x128xf32, #tpu.memory_space<vmem>>, vector<16x128xf32>
    tpu.vector_store %arg9[%c0_18, %c0_19], %37 {strides = array<i32>} : memref<16x128xf32, #tpu.memory_space<vmem>>, vector<16x128xf32>,
    return
  }
  func.func @transform_0(%arg0: i32, %arg1: i32, %arg2: i32) -> (i32, i32) {
    %c0_i32 = arith.constant 0 : i32
    return %arg0, %arg2 : i32, i32
  }
  func.func @transform_1(%arg0: i32, %arg1: i32, %arg2: i32) -> (i32, i32) {
    %c0_i32 = arith.constant 0 : i32
    return %arg2, %arg1 : i32, i32
  }
  func.func @transform_2(%arg0: i32, %arg1: i32, %arg2: i32) -> (i32, i32) {
    %c0_i32 = arith.constant 0 : i32
    %c0_i32_0 = arith.constant 0 : i32
    return %c0_i32, %arg1 : i32, i32
  }
  func.func @transform_3(%arg0: i32, %arg1: i32, %arg2: i32) -> (i32, i32) {
    %c0_i32 = arith.constant 0 : i32
    return %arg0, %arg1 : i32, i32
  }
  func.func @transform_4(%arg0: i32, %arg1: i32, %arg2: i32) -> (i32, i32) {
    %c0_i32 = arith.constant 0 : i32
    %c0_i32_0 = arith.constant 0 : i32
    return %c0_i32, %arg1 : i32, i32
  }
  func.func @transform_5(%arg0: i32, %arg1: i32, %arg2: i32) -> (i32, i32) {
    %c0_i32 = arith.constant 0 : i32
    %c0_i32_0 = arith.constant 0 : i32
    return %c0_i32, %arg1 : i32, i32
  }
  func.func @transform_6(%arg0: i32, %arg1: i32, %arg2: i32) -> (i32, i32) {
    %c0_i32 = arith.constant 0 : i32
    return %arg0, %arg1 : i32, i32
  }
}

</mosaic_0001>

<bundles_post_ra>
// kernel: forward.5
= control target key start
LH: loop header
LB: loop body
LE: loop exit
PB: predicated region body
PF: predicated region fallthrough
CT: control target
= control target key end

     0   :  { %8 = vsyncpa [#allocation3], 0  ;;  %s207_s0 = inlined_call_operand.hbm [shape: f32[16,32], index: 0, kind: input, shape index: {}]   ;;  %s208_s1 = inlined_call_operand.hbm [shape: bf16[32,128], index: 1, kind: input, shape index: {}]   ;;  %s209_s2 = inlined_call_operand.vmem [shape: f32[1,128], index: 2, kind: input, shape index: {}]   ;;  %s210_s3 = inlined_call_operand.vmem [shape: f32[16,128], index: 3, kind: output, shape index: {}]  }
   0x1   :  { %s14_s14 = sshll.u32 %s207_s0, 4  ;;  %s15_s14 = int_to_ptr.hbm [resolvable:$true] %s14_s14 }
   0x2   :  { %9 = vsyncpa [#allocation5], 0  ;;  %s166_s15 = smov [#allocation2]   ;;  %s27_s19 = sshll.u32 %s208_s1, 4  ;;  %s28_s19 = int_to_ptr.hbm [resolvable:$true] %s27_s19 }
   0x3   :  { %s16_s16 = sshll.u32 %s166_s15, 4  ;;  %s167_s20 = smov 128   ;;  %s17_s16 = int_to_ptr.vmem [resolvable:$true] %s16_s16 }
   0x4   :  { %s168_s21 = smov 8   ;;  %s169_s22 = smov [#allocation4]  }
   0x5   :  { %22 = dma.hbm_to_vmem [thread:$0]  %s15_s14, 256, %s17_s16, [#allocation3], %s167_s20, %s167_s20, %s168_s21  }
   0x6   :  { %s29_s23 = sshll.u32 %s169_s22, 4  ;;  %s170_s24 = smov 64   ;;  %s30_s23 = int_to_ptr.vmem [resolvable:$true] %s29_s23 }
   0x7   :  { %s171_s25 = smov 4  }
   0x8   :  { %35 = dma.hbm_to_vmem [thread:$0]  %s28_s19, 256, %s30_s23, [#allocation5], %s170_s24, %s170_s24, %s171_s25  }
   0x9   :  { %162 = dma.done.wait [#allocation3], 256  }
   0xa   :  { %163 = vsyncadd [#allocation3], 4294967040 }
   0xb   :  { %164 = dma.done.wait [#allocation5], 256  }
   0xc   :  { %165 = vsyncadd [#allocation5], 4294967040  ;;  %v106_v0 = vld [vmem:[#allocation4 + $0x8] sm:$0xff]  ;;  %v105_v1 = vld [vmem:[#allocation4] sm:$0xff]  ;;  %vm70_vm0 = vcmask 261120  }
   0xd   :  { %80 = vmatpush.bf16.msra.mxu0 %v106_v0  ;;  %v47_v2 = vld [vmem:[#allocation2] sm:$0xff]  ;;  %v48_v3 = vld [vmem:[#allocation2 + $0x8] sm:$0xff] }
   0xe   :  { %v49_v4 = vpack.c.bf16 %v48_v3, %v47_v2  ;;  %v113_v5 = vld [vmem:[%s209_s2] ss:$0 sm:$0xff] }
  0x11   :  { %81 = vmatpush.bf16.msra.mxu0 %v105_v1 }
  0x14   :  { %104 = vmatmul.msk.bf16.vlgmr.msra.gmra.mxu0 %vm70_vm0, %v49_v4 }
  0x91   :  { %v83_v6 = vpop.f32.mrf.mxu0 }
  0x92   :  { %v84_v7 = vadd.f32 %v113_v5, %v83_v6 }
  0x94   :  { %88 = vst [vmem:[%s210_s3] sm:$0xff] %v84_v7 }
  0x99   :  { %v85_v8 = vpop.f32.mrf.mxu0 }
  0x9a   :  { %v86_v9 = vadd.f32 %v113_v5, %v85_v8 }
  0x9c   :  { %89 = vst [vmem:[%s210_s3 + $0x8] sm:$0xff] %v86_v9 }
  0x9d   :  { %94 = vsyncpa [#allocation3], 1 }
  0x9e   :  { %95 = vsyncpa [#allocation5], 1 }

// kernel: forward.8
= control target key start
LH: loop header
LB: loop body
LE: loop exit
PB: predicated region body
PF: predicated region fallthrough
CT: control target
= control target key end

     0   :  { %vm38_vm0 = vcmask 261120   ;;  %s137_s1 = inlined_call_operand.vmem [shape: bf16[32,128], index: 1, kind: input, shape index: {}]   ;;  %s138_s0 = inlined_call_operand.vmem [shape: f32[16,32], index: 0, kind: input, shape index: {}]   ;;  %s139_s2 = inlined_call_operand.vmem [shape: f32[1,128], index: 2, kind: input, shape index: {}]   ;;  %s140_s3 = inlined_call_operand.vmem [shape: f32[16,128], index: 3, kind: output, shape index: {}]  }
   0x1   :  { %v90_v0 = vld [vmem:[%s137_s1 + $0x8] sm:$0xff]  ;;  %v89_v1 = vld [vmem:[%s137_s1] sm:$0xff] }
   0x2   :  { %48 = vmatpush.bf16.msra.mxu0 %v90_v0  ;;  %v15_v2 = vld [vmem:[%s138_s0] sm:$0xff]  ;;  %v16_v3 = vld [vmem:[%s138_s0 + $0x8] sm:$0xff] }
   0x3   :  { %v17_v4 = vpack.c.bf16 %v16_v3, %v15_v2  ;;  %v91_v5 = vld [vmem:[%s139_s2] ss:$0 sm:$0xff] }
   0x6   :  { %49 = vmatpush.bf16.msra.mxu0 %v89_v1 }
   0x9   :  { %88 = vmatmul.msk.bf16.vlgmr.msra.gmra.mxu0 %vm38_vm0, %v17_v4 }
  0x86   :  { %v51_v6 = vpop.f32.mrf.mxu0 }
  0x87   :  { %v52_v7 = vadd.f32 %v91_v5, %v51_v6 }
  0x89   :  { %v56_v8 = vmul.f32 %v52_v7, %v52_v7 }
  0x8b   :  { %v58_v9 = vmul.f32 %v56_v8, %v52_v7 }
  0x8d   :  { %v60_v10 = vmul.f32 0.044715, %v58_v9 }
  0x8e   :  { %v53_v11 = vpop.f32.mrf.mxu0 }
  0x8f   :  { %v62_v12 = vadd.f32 %v60_v10, %v52_v7  ;;  %v54_v13 = vadd.f32 %v91_v5, %v53_v11 }
  0x91   :  { %v64_v14 = vmul.f32 0.7978846, %v62_v12  ;;  %v57_v15 = vmul.f32 %v54_v13, %v54_v13 }
  0x93   :  { %92 = vtanh.f32 %v64_v14  ;;  %v59_v16 = vmul.f32 %v57_v15, %v54_v13 }
  0x95   :  { %v61_v17 = vmul.f32 0.044715, %v59_v16 }
  0x97   :  { %v63_v18 = vadd.f32 %v61_v17, %v54_v13 }
  0x99   :  { %v93_v19 = vpop.eup %92  ;;  %v65_v20 = vmul.f32 0.7978846, %v63_v18 }
  0x9a   :  { %v68_v21 = vadd.f32 1.0, %v93_v19 }
  0x9b   :  { %94 = vtanh.f32 %v65_v20 }
  0x9c   :  { %v70_v22 = vmul.f32 0.5, %v68_v21 }
  0x9e   :  { %v72_v23 = vmul.f32 %v70_v22, %v52_v7 }
  0xa0   :  { %74 = vst [vmem:[%s140_s3] sm:$0xff] %v72_v23 }
  0xa1   :  { %v95_v24 = vpop.eup %94 }
  0xa2   :  { %v69_v25 = vadd.f32 1.0, %v95_v24 }
  0xa4   :  { %v71_v26 = vmul.f32 0.5, %v69_v25 }
  0xa6   :  { %v73_v27 = vmul.f32 %v71_v26, %v54_v13 }
  0xa8   :  { %75 = vst [vmem:[%s140_s3 + $0x8] sm:$0xff] %v73_v27 }

// kernel: forward.6
= control target key start
LH: loop header
LB: loop body
LE: loop exit
PB: predicated region body
PF: predicated region fallthrough
CT: control target
= control target key end

     0   :  { %s969_s12 = smov 0   ;;  %s971_s13 = smov 0   ;;  %s1113_s0 = inlined_call_operand.vmem [shape: f32[2,8,32], index: 0, kind: input, shape index: {}]   ;;  %s1114_s1 = inlined_call_operand.vmem [shape: f32[2,8,32], index: 1, kind: input, shape index: {}]   ;;  %s1115_s2 = inlined_call_operand.vmem [shape: f32[2,8,32], index: 2, kind: input, shape index: {}]   ;;  %s1116_s3 = inlined_call_operand.vmem [shape: f32[2,8,32], index: 3, kind: output, shape index: {}]  }
   0x1   :  { %s973_s14 = smov 0  }
   0x2 LB: > { %s32_s15 = sadd.s32 1, %s934_s13  ;;  %p841_p0 = scmp.ge.s32.totalorder %s938_s14, 1  ;;  %s938_s14 = sphi %s973_s14, %s13_s14   ;;  %s934_s13 = sphi %s971_s13, %s1120_s13   ;;  %s930_s12 = sphi %s969_s12, %s1119_s12  }
   0x3   : > { %p34_p1 = scmp.ge.s32.totalorder %s32_s15, 2  ;;  %p206_p2 = scmp.lt.s32.totalorder %s938_s14, 3 }
   0x5   : > { %s1122_s15 = smov (%p34_p1, %s32_s15), 0  ;;  %p207_p3 = pnand %p841_p0, %p206_p2 }
   0x6   : > { %p252_p4 = scmp.lt.s32.totalorder (!%p207_p3), %s930_s12, 1  ;;  %s942_s23 = smov (!%p207_p3), 120  }
   0x7   : > { %210 = sbr.rel (%p207_p3) target bundleno = 1245 (0x4dd), region = 32  ;;  %s943_s24 = smov (!%p207_p3), 112  }
   0x8   : > { %s945_s25 = smov (!%p207_p3), 104   ;;  %s946_s5 = smov (!%p207_p3), 8  }
   0x9   : > { %s947_s6 = smov (!%p207_p3), 16   ;;  %s948_s7 = smov (!%p207_p3), 24  }
   0xc   : > { %s1124_s12 = smov (!%p252_p4, %s930_s12), 1  ;;  %vm302_vm0 = vcmask 64512   ;;  %vm293_vm1 = vcmask 7168   ;;  %v940_v5 = vmov -1e+30   ;;  %v318_v6 = vlaneseq }
   0xd   : > { %s987_s16 = sshll.u32 %s1124_s12, 3  ;;  %294 = vst.msk [vmem:[#allocation2] sm:$0xff] %vm293_vm1, %v940_v5  ;;  %v941_v17 = vmov 0   ;;  %v944_v18 = vmov 0.0   ;;  %vm387_vm5 = vcmask 1043456   ;;  %vm694_vm6 = vcmask 130112  }
   0xe   : > { %s267_s19 = scalar_lea.vmem %s1114_s1, %s987_s16  ;;  %s258_s22 = scalar_lea.vmem %s1113_s0, %s987_s16  ;;  %295 = vst.msk [vmem:[#allocation2 + $0x8] sm:$0xff] %vm293_vm1, %v940_v5  ;;  %v319_v7 = vshrl.u32 %v318_v6, 7  ;;  %v324_v8 = vand.u32 127, %v318_v6  ;;  %889 = vset.pattern.permute.xlu1 %v941_v17  ;;  %890 = vset.pattern.permute.xlu2 %v941_v17  ;;  %vm711_vm7 = vcmask 195712   ;;  %vm728_vm8 = vcmask 261312  }
   0xf   : > { %v313_v0 = vld [vmem:[%s267_s19] sm:$0xff]  ;;  %296 = vst.msk [vmem:[#allocation2 + $0x10] sm:$0xff] %vm293_vm1, %v940_v5  ;;  %891 = vset.pattern.permute.xlu0 %v941_v17  ;;  %s278_s28 = scalar_lea.vmem %s1115_s2, %s987_s16  ;;  %s1096_s4 = scalar_lea.vmem %s1116_s3, %s987_s16 }
  0x10   : > { %v314_v1 = vpack.c.bf16 %v313_v0, %v313_v0  ;;  %v311_v3 = vld [vmem:[%s258_s22] sm:$0xff]  ;;  %297 = vst.msk [vmem:[#allocation2 + $0x18] sm:$0xff] %vm293_vm1, %v940_v5  ;;  %vm327_vm2 = vcmp.le.s32.totalorder %v324_v8, %v319_v7  ;;  %vm328_vm3 = vcmp.lt.s32.totalorder %v324_v8, 8 }
  0x11   : > { %v312_v4 = vpack.c.bf16 %v311_v3, %v311_v3  ;;  %vm1003_vm4 = vmand %vm327_vm2, %vm328_vm3  ;;  %298 = vst.msk [vmem:[#allocation3] sm:$0xff] %vm293_vm1, %v944_v18  ;;  %v315_v28 = vld [vmem:[%s278_s28] sm:$0xff] }
  0x12   : > { %v335_v2 = vsel %vm302_vm0, %v314_v1, 0  ;;  %v413_v15 = vunpack.c.l.b16 %v314_v1  ;;  %299 = vst.msk [vmem:[#allocation3 + $0x8] sm:$0xff] %vm293_vm1, %v944_v18  ;;  %v316_v29 = vpack.c.bf16 %v315_v28, %v315_v28 }
  0x13   : > { %344 = vmatpush.bf16.xpose.msra.mxu0 %v335_v2  ;;  %300 = vst.msk [vmem:[#allocation3 + $0x10] sm:$0xff] %vm293_vm1, %v944_v18  ;;  %v408_v19 = vunpack.c.l.b16 %v312_v4 }
  0x14   : > { %v414_v16 = vpack.c.b16 %v413_v15, %v413_v15  ;;  %301 = vst.msk [vmem:[#allocation3 + $0x18] sm:$0xff] %vm293_vm1, %v944_v18  ;;  %v1022_v21 = vld [vmem:[#allocation2] sm:$0xff]  ;;  %v389_v30 = vsel %vm387_vm5, %v316_v29, 0  ;;  %v473_v58 = vunpack.c.l.b16 %v316_v29 }
  0x15   : > { %303 = vst.msk [vmem:[#allocation4] sm:$0xff] %vm302_vm0, %v944_v18  ;;  %v409_v20 = vpack.c.b16 %v408_v19, %v408_v19  ;;  %398 = vmatpush.bf16.msra.mxu1 %v389_v30  ;;  %v439_v2 = vld [vmem:[#allocation2 + $0x8] sm:$0xff] }
  0x16   : > { %501 = vrot.lane.b32.xlu2 %v414_v16, %s943_s24  ;;  %304 = vst.msk [vmem:[#allocation4 + $0x8] sm:$0xff] %vm302_vm0, %v944_v18  ;;  %v474_v60 = vpack.c.b16 %v473_v58, %v473_v58  ;;  %v525_v5 = vld [vmem:[#allocation2 + $0x10] sm:$0xff] }
  0x17   : > { %305 = vst.msk [vmem:[#allocation4 + $0x10] sm:$0xff] %vm302_vm0, %v944_v18  ;;  %v608_v62 = vld [vmem:[#allocation2 + $0x18] sm:$0xff] }
  0x18   : > { %306 = vst.msk [vmem:[#allocation4 + $0x18] sm:$0xff] %vm302_vm0, %v944_v18 }
  0x1a   : > { %846 = vmatmul.msk.bf16.vlgmr.msra.gmra.mxu0 %vm302_vm0, %v312_v4 }
  0x1e   : > { %584 = vrot.lane.b32.xlu2 %v414_v16, %s945_s25 }
  0x26   : > { %582 = vrot.lane.b32.xlu2 %v409_v20, %s945_s25 }
  0x70   : > { %v502_v27 = vpop.permute.xlu2 %501 }
  0x71   : > { %v507_v33 = vsel %vm302_vm0, %v502_v27, 0 }
  0x72   : > { %516 = vmatpush.bf16.xpose.msrb.mxu1 %v507_v33 }
  0x78   : > { %v585_v31 = vpop.permute.xlu2 %584 }
  0x79   : > { %v590_v32 = vsel %vm302_vm0, %v585_v31, 0 }
  0x7a   : > { %599 = vmatpush.bf16.xpose.msrb.mxu0 %v590_v32 }
  0x80   : > { %v583_v34 = vpop.permute.xlu2 %582 }
  0x81   : > { %852 = vmatmul.msk.bf16.vlgmr.msrb.gmra.mxu0 %vm302_vm0, %v583_v34 }
  0x97   : > { %v346_v9 = vpop.f32.mrf.mxu0 }
  0x98   : > { %v350_v11 = vmul.f32 0.35355338, %v346_v9 }
  0x9a   : > { %v351_v12 = vsel %vm1003_vm4, %v350_v11, -1e+30 }
  0x9b   : > { %v353_v13 = vsel %vm302_vm0, %v351_v12, -inf }
  0x9c   : > { %354 = vmax.xlane.f32.xlu0 %v353_v13 }
  0x9f   : > { %v348_v14 = vpop.f32.mrf.mxu0 }
  0xb0   : > { %415 = vrot.lane.b32.xlu0 %v414_v16, %s942_s23  ;;  %v368_v16 = vld [vmem:[#allocation3] sm:$0xff] }
  0xfe   : > { %v601_v42 = vpop.f32.mrf.mxu0 }
  0xff   : > { %v605_v43 = vmul.f32 0.35355338, %v601_v42 }
 0x101   : > { %v1048_v44 = vsel %vm1003_vm4, %v605_v43, -1e+30 }
 0x102   : > { %v609_v45 = vsel %vm302_vm0, %v1048_v44, -inf }
 0x103   : > { %610 = vmax.xlane.f32.xlu0 %v609_v45 }
 0x106   : > { %v603_v46 = vpop.f32.mrf.mxu0 }
 0x10f   : > { %v355_v22 = vpop.xlane.xlu0 %354 }
 0x110   : > { %v1025_v23 = vmax.f32 %v1022_v21, %v355_v22 }
 0x112   : > { %v357_v24 = vsub.f32 %v1022_v21, %v1025_v23  ;;  %406 = vst.msk [vmem:[#allocation2] sm:$0xff] %vm293_vm1, %v1025_v23  ;;  %362 = vperm.xlu1 %889, %v1025_v23  }
 0x114   : > { %v358_v7 = vmul.f32 1.442695, %v357_v24 }
 0x11a   : > { %410 = vrot.lane.b32.xlu1 %v409_v20, %s942_s23 }
 0x122   : > { %499 = vrot.lane.b32.xlu1 %v409_v20, %s943_s24  ;;  %v416_v25 = vpop.permute.xlu0 %415 }
 0x123   : > { %v421_v26 = vsel %vm302_vm0, %v416_v25, 0 }
 0x124   : > { %430 = vmatpush.bf16.xpose.msra.mxu2 %v421_v26 }
 0x176   : > { %v611_v63 = vpop.xlane.xlu0 %610 }
 0x177   : > { %v612_v0 = vmax.f32 %v608_v62, %v611_v63 }
 0x179   : > { %v613_v1 = vsub.f32 %v608_v62, %v612_v0  ;;  %664 = vst.msk [vmem:[#allocation2 + $0x18] sm:$0xff] %vm293_vm1, %v612_v0 }
 0x17b   : > { %v614_v34 = vmul.f32 1.442695, %v613_v1 }
 0x184   : > { %v363_v35 = vpop.permute.xlu1 %362 }
 0x185   : > { %v365_v36 = vsub.f32 %v351_v12, %v363_v35 }
 0x187   : > { %v366_v37 = vmul.f32 1.442695, %v365_v36 }
 0x189   : > { %892 = vpow2.f32 %v366_v37  ;;  %v376_v37 = vld [vmem:[#allocation4] sm:$0xff] }
 0x18a   : > { %894 = vpow2.f32 %v358_v7 }
 0x18c   : > { %v411_v38 = vpop.permute.xlu1 %410 }
 0x18d   : > { %848 = vmatmul.msk.bf16.vlgmr.msra.gmra.mxu2 %vm302_vm0, %v411_v38 }
 0x18f   : > { %v893_v39 = vpop.eup %892 }
 0x190   : > { %v383_v40 = vpack.c.bf16 %v893_v39, %v893_v39  ;;  %v370_v61 = vsel %vm302_vm0, %v893_v39, 0.0  ;;  %v895_v12 = vpop.eup %894 }
 0x191   : > { %v369_v18 = vmul.f32 %v895_v12, %v368_v16 }
 0x192   : > { %847 = vmatmul.msk.bf16.vlgmr.msra.gmra.mxu1 %vm302_vm0, %v383_v40 }
 0x194   : > { %v500_v41 = vpop.permute.xlu1 %499 }
 0x1a2   : > { %850 = vmatmul.msk.bf16.vlgmr.msrb.gmra.mxu1 %vm302_vm0, %v500_v41 }
 0x20f   : > { %v1052_v47 = vpop.f32.mrf.mxu1 }
 0x210   : > { %v432_v48 = vpop.f32.mrf.mxu2 }
 0x211   : > { %v436_v49 = vmul.f32 0.35355338, %v432_v48 }
 0x213   : > { %v437_v50 = vsel %vm1003_vm4, %v436_v49, -1e+30 }
 0x214   : > { %v440_v51 = vsel %vm302_vm0, %v437_v50, -inf }
 0x215   : > { %441 = vmax.xlane.f32.xlu1 %v440_v51 }
 0x217   : > { %v402_v52 = vpop.f32.mrf.mxu1 }
 0x218   : > { %v434_v53 = vpop.f32.mrf.mxu2  ;;  %v456_v52 = vld [vmem:[#allocation3 + $0x8] sm:$0xff] }
 0x21f   : > { %v518_v54 = vpop.f32.mrf.mxu1 }
 0x220   : > { %v522_v55 = vmul.f32 0.35355338, %v518_v54 }
 0x222   : > { %v1059_v56 = vsel %vm1003_vm4, %v522_v55, -1e+30 }
 0x223   : > { %v526_v57 = vsel %vm302_vm0, %v1059_v56, -inf }
 0x224   : > { %527 = vmax.xlane.f32.xlu2 %v526_v57 }
 0x227   : > { %v520_v59 = vpop.f32.mrf.mxu1 }
 0x22e   : > { %475 = vrot.lane.b32.xlu1 %v474_v60, %s942_s23 }
 0x236   : > { %558 = vrot.lane.b32.xlu1 %v474_v60, %s943_s24 }
 0x260   : > { %371 = vadd.xlane.f32.xlu1 %v370_v61  ;;  %v464_v61 = vld [vmem:[#allocation4 + $0x8] sm:$0xff] }
 0x288   : > { %v442_v3 = vpop.xlane.xlu1 %441 }
 0x289   : > { %v443_v4 = vmax.f32 %v439_v2, %v442_v3  ;;  %v633_v3 = vld [vmem:[#allocation4 + $0x18] sm:$0xff] }
 0x28b   : > { %498 = vst.msk [vmem:[#allocation2 + $0x8] sm:$0xff] %vm293_vm1, %v443_v4  ;;  %449 = vperm.xlu2 %890, %v443_v4   ;;  %v444_v10 = vsub.f32 %v439_v2, %v443_v4 }
 0x28d   : > { %v445_v11 = vmul.f32 1.442695, %v444_v10  ;;  %v542_v10 = vld [vmem:[#allocation3 + $0x10] sm:$0xff] }
 0x28f   : > { %896 = vpow2.f32 %v445_v11 }
 0x293   : > { %618 = vperm.xlu2 %890, %v612_v0  }
 0x295   : > { %v897_v13 = vpop.eup %896 }
 0x296   : > { %v457_v53 = vmul.f32 %v897_v13, %v456_v52 }
 0x297   : > { %v528_v6 = vpop.xlane.xlu2 %527 }
 0x298   : > { %v529_v8 = vmax.f32 %v525_v5, %v528_v6 }
 0x29a   : > { %v530_v9 = vsub.f32 %v525_v5, %v529_v8  ;;  %581 = vst.msk [vmem:[#allocation2 + $0x10] sm:$0xff] %vm293_vm1, %v529_v8  ;;  %535 = vperm.xlu0 %891, %v529_v8  }
 0x29b   : > { %641 = vrot.lane.b32.xlu2 %v474_v60, %s945_s25 }
 0x29c   : > { %v531_v42 = vmul.f32 1.442695, %v530_v9 }
 0x2a0   : > { %v476_v14 = vpop.permute.xlu1 %475 }
 0x2a1   : > { %v481_v17 = vsel %vm387_vm5, %v476_v14, 0 }
 0x2a2   : > { %490 = vmatpush.bf16.msra.mxu3 %v481_v17 }
 0x2a3   : > { %379 = vperm.xlu2 %890, %v895_v12  }
 0x2a8   : > { %v559_v15 = vpop.permute.xlu1 %558 }
 0x2a9   : > { %v564_v30 = vsel %vm387_vm5, %v559_v15, 0 }
 0x2aa   : > { %573 = vmatpush.bf16.msrb.mxu3 %v564_v30 }
 0x2ab   : > { %467 = vperm.xlu2 %890, %v897_v13  }
 0x2d3   : > { %v372_v19 = vpop.xlane.xlu1 %371 }
 0x2d4   : > { %v373_v20 = vadd.f32 %v372_v19, %v369_v18  ;;  %v550_v18 = vld [vmem:[#allocation4 + $0x10] sm:$0xff] }
 0x2d6   : > { %375 = vst.msk [vmem:[#allocation3] sm:$0xff] %vm293_vm1, %v373_v20 }
 0x2e5   : > { %v450_v21 = vpop.permute.xlu2 %449 }
 0x2e6   : > { %v452_v22 = vsub.f32 %v437_v50, %v450_v21 }
 0x2e8   : > { %v453_v23 = vmul.f32 1.442695, %v452_v22 }
 0x2ea   : > { %898 = vpow2.f32 %v453_v23 }
 0x2ed   : > { %v619_v24 = vpop.permute.xlu2 %618 }
 0x2ee   : > { %v621_v25 = vsub.f32 %v1048_v44, %v619_v24 }
 0x2f0   : > { %v899_v26 = vpop.eup %898  ;;  %v622_v27 = vmul.f32 1.442695, %v621_v25 }
 0x2f1   : > { %v458_v28 = vsel %vm302_vm0, %v899_v26, 0.0  ;;  %v471_v29 = vpack.c.bf16 %v899_v26, %v899_v26 }
 0x2f2   : > { %900 = vpow2.f32 %v622_v27  ;;  %459 = vadd.xlane.f32.xlu0 %v458_v28 }
 0x2f3   : > { %849 = vmatmul.msk.bf16.vlgmr.msra.gmra.mxu3 %vm302_vm0, %v471_v29  ;;  %902 = vpow2.f32 %v614_v34 }
 0x2f4   : > { %904 = vpow2.f32 %v531_v42 }
 0x2f5   : > { %v642_v31 = vpop.permute.xlu2 %641 }
 0x2f6   : > { %v647_v32 = vsel %vm387_vm5, %v642_v31, 0 }
 0x2f7   : > { %656 = vmatpush.bf16.msrb.mxu2 %v647_v32 }
 0x2f8   : > { %v901_v33 = vpop.eup %900 }
 0x2f9   : > { %v627_v35 = vsel %vm302_vm0, %v901_v33, 0.0  ;;  %v640_v36 = vpack.c.bf16 %v901_v33, %v901_v33  ;;  %v903_v41 = vpop.eup %902 }
 0x2fa   : > { %628 = vadd.xlane.f32.xlu1 %v627_v35  ;;  %v905_v46 = vpop.eup %904 }
 0x2fb   : > { %853 = vmatmul.msk.bf16.vlgmr.msrb.gmra.mxu2 %vm302_vm0, %v640_v36  ;;  %v543_v11 = vmul.f32 %v905_v46, %v542_v10 }
 0x2fd   : > { %v380_v38 = vpop.permute.xlu2 %379 }
 0x2fe   : > { %v382_v39 = vmul.f32 %v380_v38, %v376_v37 }
 0x300   : > { %v404_v40 = vadd.f32 %v1052_v47, %v382_v39  ;;  %v668_v47 = vld [vmem:[#allocation3] sm:$0xff] }
 0x302   : > { %405 = vst.msk [vmem:[#allocation4] sm:$0xff] %vm302_vm0, %v404_v40 }
 0x305   : > { %v468_v62 = vpop.permute.xlu2 %467 }
 0x306   : > { %636 = vperm.xlu0 %891, %v903_v41   ;;  %v470_v63 = vmul.f32 %v468_v62, %v464_v61 }
 0x309   : > { %v670_v14 = vld [vmem:[#allocation4] sm:$0xff] }
 0x30c   : > { %v536_v43 = vpop.permute.xlu0 %535 }
 0x30d   : > { %v538_v44 = vsub.f32 %v1059_v56, %v536_v43  ;;  %v625_v56 = vld [vmem:[#allocation3 + $0x18] sm:$0xff] }
 0x30e   : > { %v626_v57 = vmul.f32 %v903_v41, %v625_v56 }
 0x30f   : > { %v539_v45 = vmul.f32 1.442695, %v538_v44 }
 0x311   : > { %906 = vpow2.f32 %v539_v45 }
 0x312   : > { %908 = vrcp.f32 %v668_v47 }
 0x313   : > { %553 = vperm.xlu1 %889, %v905_v46  }
 0x317   : > { %v907_v48 = vpop.eup %906 }
 0x318   : > { %v544_v49 = vsel %vm302_vm0, %v907_v48, 0.0  ;;  %v557_v50 = vpack.c.bf16 %v907_v48, %v907_v48  ;;  %v909_v51 = vpop.eup %908 }
 0x319   : > { %545 = vadd.xlane.f32.xlu2 %v544_v49 }
 0x31a   : > { %851 = vmatmul.msk.bf16.vlgmr.msrb.gmra.mxu3 %vm302_vm0, %v557_v50 }
 0x331   : > { %673 = vperm.xlu2 %890, %v909_v51  }
 0x365   : > { %v460_v54 = vpop.xlane.xlu0 %459 }
 0x366   : > { %v461_v55 = vadd.f32 %v460_v54, %v457_v53 }
 0x368   : > { %462 = vst.msk [vmem:[#allocation3 + $0x8] sm:$0xff] %vm293_vm1, %v461_v55 }
 0x36d   : > { %v629_v58 = vpop.xlane.xlu1 %628 }
 0x36e   : > { %v630_v59 = vadd.f32 %v629_v58, %v626_v57 }
 0x36f   : > { %v680_v60 = vld [vmem:[#allocation3 + $0x8] sm:$0xff] }
 0x370   : > { %631 = vst.msk [vmem:[#allocation3 + $0x18] sm:$0xff] %vm293_vm1, %v630_v59  ;;  %910 = vrcp.f32 %v680_v60 }
 0x376   : > { %v911_v0 = vpop.eup %910  ;;  %v492_v1 = vpop.f32.mrf.mxu3 }
 0x377   : > { %v496_v2 = vadd.f32 %v492_v1, %v470_v63  ;;  %686 = vperm.xlu0 %891, %v911_v0   ;;  %v714_v28 = vld [vmem:[#allocation3 + $0x18] sm:$0xff] }
 0x378   : > { %v637_v4 = vpop.permute.xlu0 %636 }
 0x379   : > { %497 = vst.msk [vmem:[#allocation4 + $0x8] sm:$0xff] %vm302_vm0, %v496_v2  ;;  %v639_v5 = vmul.f32 %v637_v4, %v633_v3 }
 0x37e   : > { %v494_v6 = vpop.f32.mrf.mxu3  ;;  %v658_v7 = vpop.f32.mrf.mxu2 }
 0x37f   : > { %v662_v8 = vadd.f32 %v658_v7, %v639_v5 }
 0x380   : > { %v683_v25 = vld [vmem:[#allocation4 + $0x8] sm:$0xff] }
 0x381   : > { %663 = vst.msk [vmem:[#allocation4 + $0x18] sm:$0xff] %vm302_vm0, %v662_v8 }
 0x385   : > { %v554_v19 = vpop.permute.xlu1 %553 }
 0x386   : > { %v660_v9 = vpop.f32.mrf.mxu2  ;;  %v556_v20 = vmul.f32 %v554_v19, %v550_v18 }
 0x388   : > { %v717_v34 = vld [vmem:[#allocation4 + $0x18] sm:$0xff] }
 0x38c   : > { %v546_v12 = vpop.xlane.xlu2 %545 }
 0x38d   : > { %v547_v13 = vadd.f32 %v546_v12, %v543_v11 }
 0x38f   : > { %548 = vst.msk [vmem:[#allocation3 + $0x10] sm:$0xff] %vm293_vm1, %v547_v13 }
 0x394   : > { %v674_v15 = vpop.permute.xlu2 %673 }
 0x395   : > { %v676_v16 = vmul.f32 %v674_v15, %v670_v14 }
 0x396   : > { %v697_v17 = vld [vmem:[#allocation3 + $0x10] sm:$0xff] }
 0x397   : > { %678 = vst.msk [vmem:[%s1096_s4] sm:$0xff] %vm302_vm0, %v676_v16  ;;  %912 = vrcp.f32 %v697_v17 }
 0x398   : > { %914 = vrcp.f32 %v714_v28 }
 0x39d   : > { %v913_v21 = vpop.eup %912  ;;  %v575_v22 = vpop.f32.mrf.mxu3 }
 0x39e   : > { %v579_v23 = vadd.f32 %v575_v22, %v556_v20  ;;  %703 = vperm.xlu0 %891, %v913_v21   ;;  %v915_v29 = vpop.eup %914 }
 0x3a0   : > { %580 = vst.msk [vmem:[#allocation4 + $0x10] sm:$0xff] %vm302_vm0, %v579_v23 }
 0x3a5   : > { %v577_v24 = vpop.f32.mrf.mxu3 }
 0x3a7   : > { %v700_v30 = vld [vmem:[#allocation4 + $0x10] sm:$0xff] }
 0x3e9   : > { %v687_v26 = vpop.permute.xlu0 %686 }
 0x3ea   : > { %v689_v27 = vmul.f32 %v687_v26, %v683_v25 }
 0x3ec   : > { %691 = vrot.lane.b32.xlu1 %v689_v27, %s946_s5 }
 0x3f4   : > { %720 = vperm.xlu1 %889, %v915_v29  }
 0x410   : > { %v704_v31 = vpop.permute.xlu0 %703 }
 0x411   : > { %v706_v32 = vmul.f32 %v704_v31, %v700_v30 }
 0x413   : > { %708 = vrot.lane.b32.xlu2 %v706_v32, %s947_s6 }
 0x45e   : > { %v692_v33 = vpop.permute.xlu1 %691 }
 0x45f   : > { %695 = vst.msk [vmem:[%s1096_s4] sm:$0xff] %vm694_vm6, %v692_v33 }
 0x466   : > { %v721_v35 = vpop.permute.xlu1 %720 }
 0x467   : > { %v723_v36 = vmul.f32 %v721_v35, %v717_v34 }
 0x469   : > { %725 = vrot.lane.b32.xlu0 %v723_v36, %s948_s7 }
 0x46d   : > { %v709_v37 = vpop.permute.xlu2 %708 }
 0x46e   : > { %712 = vst.msk [vmem:[%s1096_s4] sm:$0xff] %vm711_vm7, %v709_v37 }
 0x4db   : > { %v726_v38 = vpop.permute.xlu0 %725 }
 0x4dc   : > { %729 = vst.msk [vmem:[%s1096_s4] sm:$0xff] %vm728_vm8, %v726_v38 }
 0x4dd PF: > { %s13_s14 = sadd.s32 1, %s938_s14   ;;  %s1119_s12 = smov %s934_s13 }
 0x4de   : > { %p10_p5 = scmp.ge.s32.totalorder %s13_s14, 4   ;;  %s1120_s13 = smov %s1122_s15 }
 0x4e0   :  { %12 = sbr.rel (!%p10_p5) target bundleno = 2 (0x2), region = 95 }

// kernel: forward.7
= control target key start
LH: loop header
LB: loop body
LE: loop exit
PB: predicated region body
PF: predicated region fallthrough
CT: control target
= control target key end

     0   :  { %vm51_vm0 = vcmask 261120   ;;  %v71_v5 = vlaneseq  ;;  %s224_s1 = inlined_call_operand.vmem [shape: bf16[32,128], index: 1, kind: input, shape index: {}]   ;;  %s225_s0 = inlined_call_operand.vmem [shape: f32[16,32], index: 0, kind: input, shape index: {}]   ;;  %s226_s2 = inlined_call_operand.vmem [shape: f32[1,128], index: 2, kind: input, shape index: {}]   ;;  %s227_s3 = inlined_call_operand.vmem [shape: f32[16,128], index: 3, kind: input, shape index: {}]   ;;  %s228_s4 = inlined_call_operand.vmem [shape: f32[1,128], index: 4, kind: input, shape index: {}]   ;;  %s229_s5 = inlined_call_operand.vmem [shape: f32[1,128], index: 5, kind: input, shape index: {}]   ;;  %s230_s6 = inlined_call_operand.vmem [shape: f32[16,128], index: 6, kind: output, shape index: {}]  }
   0x1   :  { %v144_v0 = vld [vmem:[%s224_s1 + $0x8] sm:$0xff]  ;;  %v143_v1 = vld [vmem:[%s224_s1] sm:$0xff] }
   0x2   :  { %61 = vmatpush.bf16.msra.mxu0 %v144_v0  ;;  %v24_v2 = vld [vmem:[%s225_s0] sm:$0xff]  ;;  %v25_v3 = vld [vmem:[%s225_s0 + $0x8] sm:$0xff]  ;;  %v72_v7 = vand.u32 127, %v71_v5 }
   0x3   :  { %v26_v4 = vpack.c.bf16 %v25_v3, %v24_v2  ;;  %v145_v6 = vld [vmem:[%s226_s2] ss:$0 sm:$0xff]  ;;  %v33_v14 = vld [vmem:[%s227_s3 + $0x8] sm:$0xff] }
   0x4   :  { %v32_v9 = vld [vmem:[%s227_s3] sm:$0xff]  ;;  %vm73_vm1 = vcmp.lt.s32.totalorder %v72_v7, 32 }
   0x5   :  { %v146_v42 = vld [vmem:[%s228_s4] ss:$0 sm:$0xff] }
   0x6   :  { %62 = vmatpush.bf16.msra.mxu0 %v143_v1  ;;  %v147_v45 = vld [vmem:[%s229_s5] ss:$0 sm:$0xff] }
   0x9   :  { %142 = vmatmul.msk.bf16.vlgmr.msra.gmra.mxu0 %vm51_vm0, %v26_v4 }
  0x86   :  { %v64_v8 = vpop.f32.mrf.mxu0 }
  0x87   :  { %v65_v10 = vadd.f32 %v145_v6, %v64_v8 }
  0x89   :  { %v69_v11 = vadd.f32 %v65_v10, %v32_v9 }
  0x8b   :  { %v74_v12 = vsel %vm73_vm1, %v69_v11, 0.0 }
  0x8c   :  { %76 = vadd.xlane.f32.xlu0 %v74_v12 }
  0x8e   :  { %v66_v13 = vpop.f32.mrf.mxu0 }
  0x8f   :  { %v67_v15 = vadd.f32 %v145_v6, %v66_v13 }
  0x91   :  { %v70_v16 = vadd.f32 %v67_v15, %v33_v14 }
  0x93   :  { %v75_v17 = vsel %vm73_vm1, %v70_v16, 0.0 }
  0x94   :  { %78 = vadd.xlane.f32.xlu0 %v75_v17 }
  0xff   :  { %v77_v18 = vpop.xlane.xlu0 %76 }
 0x100   :  { %v80_v19 = vmul.f32 0.03125, %v77_v18 }
 0x102   :  { %v82_v20 = vsub.f32 %v69_v11, %v80_v19 }
 0x104   :  { %v84_v21 = vsel %vm73_vm1, %v82_v20, 0.0 }
 0x105   :  { %v86_v22 = vmul.f32 %v84_v21, %v84_v21 }
 0x107   :  { %88 = vadd.xlane.f32.xlu1 %v86_v22  ;;  %v79_v23 = vpop.xlane.xlu0 %78 }
 0x108   :  { %v81_v24 = vmul.f32 0.03125, %v79_v23 }
 0x10a   :  { %v83_v25 = vsub.f32 %v70_v16, %v81_v24 }
 0x10c   :  { %v85_v26 = vsel %vm73_vm1, %v83_v25, 0.0 }
 0x10d   :  { %v87_v27 = vmul.f32 %v85_v26, %v85_v26 }
 0x10f   :  { %90 = vadd.xlane.f32.xlu1 %v87_v27 }
 0x17a   :  { %v89_v28 = vpop.xlane.xlu1 %88 }
 0x17b   :  { %v92_v29 = vmul.f32 0.03125, %v89_v28 }
 0x17d   :  { %v94_v30 = vadd.f32 1e-05, %v92_v29 }
 0x17f   :  { %148 = vrsqrt.f32 %v94_v30  ;;  %vm102_vm3 = vweird.f32 %v94_v30 }
 0x182   :  { %v91_v31 = vpop.xlane.xlu1 %90 }
 0x183   :  { %v93_v32 = vmul.f32 0.03125, %v91_v31 }
 0x185   :  { %v149_v33 = vpop.eup %148  ;;  %v95_v34 = vadd.f32 1e-05, %v93_v32 }
 0x186   :  { %v97_v35 = vmul.f32 %v149_v33, %v94_v30  ;;  %vm103_vm2 = vweird.f32 %v149_v33 }
 0x187   :  { %150 = vrsqrt.f32 %v95_v34  ;;  %vm104_vm4 = vmor %vm102_vm3, %vm103_vm2  ;;  %vm112_vm6 = vweird.f32 %v95_v34 }
 0x188   :  { %v98_v36 = vmul.f32 %v149_v33, %v97_v35 }
 0x18a   :  { %v99_v37 = vmul.f32 0.5, %v98_v36 }
 0x18c   :  { %v100_v38 = vsub.f32 1.5, %v99_v37 }
 0x18d   :  { %v151_v39 = vpop.eup %150 }
 0x18e   :  { %v101_v40 = vmul.f32 %v149_v33, %v100_v38  ;;  %v107_v41 = vmul.f32 %v151_v39, %v95_v34  ;;  %vm113_vm5 = vweird.f32 %v151_v39 }
 0x18f   :  { %vm114_vm7 = vmor %vm112_vm6, %vm113_vm5 }
 0x190   :  { %v105_v43 = vsel %vm104_vm4, %v149_v33, %v101_v40  ;;  %v108_v44 = vmul.f32 %v151_v39, %v107_v41 }
 0x191   :  { %v116_v46 = vmul.f32 %v105_v43, %v84_v21 }
 0x192   :  { %v109_v47 = vmul.f32 0.5, %v108_v44 }
 0x193   :  { %v121_v48 = vmul.f32 %v146_v42, %v116_v46 }
 0x194   :  { %v110_v49 = vsub.f32 1.5, %v109_v47 }
 0x195   :  { %v126_v50 = vadd.f32 %v147_v45, %v121_v48 }
 0x196   :  { %v111_v51 = vmul.f32 %v151_v39, %v110_v49 }
 0x197   :  { %128 = vst [vmem:[%s230_s6] sm:$0xff] %v126_v50 }
 0x198   :  { %v115_v52 = vsel %vm114_vm7, %v151_v39, %v111_v51 }
 0x199   :  { %v117_v53 = vmul.f32 %v115_v52, %v85_v26 }
 0x19b   :  { %v122_v54 = vmul.f32 %v146_v42, %v117_v53 }
 0x19d   :  { %v127_v55 = vadd.f32 %v147_v45, %v122_v54 }
 0x19f   :  { %129 = vst [vmem:[%s230_s6 + $0x8] sm:$0xff] %v127_v55 }

// kernel: forward.9
= control target key start
LH: loop header
LB: loop body
LE: loop exit
PB: predicated region body
PF: predicated region fallthrough
CT: control target
= control target key end

     0   :  { %v114_v11 = vlaneseq  ;;  %s314_s1 = inlined_call_operand.vmem [shape: bf16[128,128], index: 1, kind: input, shape index: {}]   ;;  %s315_s2 = inlined_call_operand.vmem [shape: f32[1,128], index: 2, kind: input, shape index: {}]   ;;  %s316_s0 = inlined_call_operand.vmem [shape: f32[16,128], index: 0, kind: input, shape index: {}]   ;;  %s317_s3 = inlined_call_operand.vmem [shape: f32[16,128], index: 3, kind: input, shape index: {}]   ;;  %s318_s4 = inlined_call_operand.vmem [shape: f32[1,128], index: 4, kind: input, shape index: {}]   ;;  %s319_s5 = inlined_call_operand.vmem [shape: f32[1,128], index: 5, kind: input, shape index: {}]   ;;  %s320_s6 = inlined_call_operand.vmem [shape: f32[16,128], index: 6, kind: output, shape index: {}]  }
   0x1   :  { %v216_v0 = vld [vmem:[%s314_s1 + $0x38] sm:$0xff]  ;;  %v215_v1 = vld [vmem:[%s314_s1 + $0x30] sm:$0xff]  ;;  %v214_v2 = vld [vmem:[%s314_s1 + $0x28] sm:$0xff] }
   0x2   :  { %98 = vmatpush.bf16.msra.mxu0 %v216_v0  ;;  %v213_v3 = vld [vmem:[%s314_s1 + $0x20] sm:$0xff]  ;;  %v212_v4 = vld [vmem:[%s314_s1 + $0x18] sm:$0xff]  ;;  %v211_v5 = vld [vmem:[%s314_s1 + $0x10] sm:$0xff]  ;;  %v115_v13 = vand.u32 127, %v114_v11 }
   0x3   :  { %v210_v6 = vld [vmem:[%s314_s1 + $0x8] sm:$0xff]  ;;  %v209_v7 = vld [vmem:[%s314_s1] sm:$0xff] }
   0x4   :  { %v23_v8 = vld [vmem:[%s316_s0] sm:$0xff]  ;;  %v24_v9 = vld [vmem:[%s316_s0 + $0x8] sm:$0xff]  ;;  %vm116_vm0 = vcmp.lt.s32.totalorder %v115_v13, 32 }
   0x5   :  { %v25_v10 = vpack.c.bf16 %v24_v9, %v23_v8  ;;  %v217_v12 = vld [vmem:[%s315_s2] ss:$0 sm:$0xff]  ;;  %v44_v20 = vld [vmem:[%s317_s3 + $0x8] sm:$0xff] }
   0x6   :  { %99 = vmatpush.bf16.msra.mxu0 %v215_v1  ;;  %v43_v15 = vld [vmem:[%s317_s3] sm:$0xff] }
   0x7   :  { %v218_v48 = vld [vmem:[%s318_s4] ss:$0 sm:$0xff] }
   0x8   :  { %v219_v51 = vld [vmem:[%s319_s5] ss:$0 sm:$0xff] }
   0xa   :  { %100 = vmatpush.bf16.msra.mxu0 %v214_v2 }
   0xe   :  { %101 = vmatpush.bf16.msra.mxu0 %v213_v3 }
  0x12   :  { %102 = vmatpush.bf16.msra.mxu0 %v212_v4 }
  0x16   :  { %103 = vmatpush.bf16.msra.mxu0 %v211_v5 }
  0x1a   :  { %104 = vmatpush.bf16.msra.mxu0 %v210_v6 }
  0x1e   :  { %105 = vmatpush.bf16.msra.mxu0 %v209_v7 }
  0x21   :  { %106 = vmatmul.bf16.vlgmr.msra.gmra.mxu0 %v25_v10 }
  0x9e   :  { %v107_v14 = vpop.f32.mrf.mxu0 }
  0x9f   :  { %v108_v16 = vadd.f32 %v217_v12, %v107_v14 }
  0xa1   :  { %v112_v17 = vadd.f32 %v108_v16, %v43_v15 }
  0xa3   :  { %v117_v18 = vsel %vm116_vm0, %v112_v17, 0.0 }
  0xa4   :  { %119 = vadd.xlane.f32.xlu0 %v117_v18 }
  0xa6   :  { %v109_v19 = vpop.f32.mrf.mxu0 }
  0xa7   :  { %v110_v21 = vadd.f32 %v217_v12, %v109_v19 }
  0xa9   :  { %v113_v22 = vadd.f32 %v110_v21, %v44_v20 }
  0xab   :  { %v118_v23 = vsel %vm116_vm0, %v113_v22, 0.0 }
  0xac   :  { %121 = vadd.xlane.f32.xlu0 %v118_v23 }
 0x117   :  { %v120_v24 = vpop.xlane.xlu0 %119 }
 0x118   :  { %v123_v25 = vmul.f32 0.03125, %v120_v24 }
 0x11a   :  { %v125_v26 = vsub.f32 %v112_v17, %v123_v25 }
 0x11c   :  { %v127_v27 = vsel %vm116_vm0, %v125_v26, 0.0 }
 0x11d   :  { %v129_v28 = vmul.f32 %v127_v27, %v127_v27 }
 0x11f   :  { %131 = vadd.xlane.f32.xlu1 %v129_v28  ;;  %v122_v29 = vpop.xlane.xlu0 %121 }
 0x120   :  { %v124_v30 = vmul.f32 0.03125, %v122_v29 }
 0x122   :  { %v126_v31 = vsub.f32 %v113_v22, %v124_v30 }
 0x124   :  { %v128_v32 = vsel %vm116_vm0, %v126_v31, 0.0 }
 0x125   :  { %v130_v33 = vmul.f32 %v128_v32, %v128_v32 }
 0x127   :  { %133 = vadd.xlane.f32.xlu1 %v130_v33 }
 0x192   :  { %v132_v34 = vpop.xlane.xlu1 %131 }
 0x193   :  { %v135_v35 = vmul.f32 0.03125, %v132_v34 }
 0x195   :  { %v137_v36 = vadd.f32 1e-05, %v135_v35 }
 0x197   :  { %220 = vrsqrt.f32 %v137_v36  ;;  %vm145_vm2 = vweird.f32 %v137_v36 }
 0x19a   :  { %v134_v37 = vpop.xlane.xlu1 %133 }
 0x19b   :  { %v136_v38 = vmul.f32 0.03125, %v134_v37 }
 0x19d   :  { %v221_v39 = vpop.eup %220  ;;  %v138_v40 = vadd.f32 1e-05, %v136_v38 }
 0x19e   :  { %v140_v41 = vmul.f32 %v221_v39, %v137_v36  ;;  %vm146_vm1 = vweird.f32 %v221_v39 }
 0x19f   :  { %222 = vrsqrt.f32 %v138_v40  ;;  %vm147_vm3 = vmor %vm145_vm2, %vm146_vm1  ;;  %vm155_vm5 = vweird.f32 %v138_v40 }
 0x1a0   :  { %v141_v42 = vmul.f32 %v221_v39, %v140_v41 }
 0x1a2   :  { %v142_v43 = vmul.f32 0.5, %v141_v42 }
 0x1a4   :  { %v143_v44 = vsub.f32 1.5, %v142_v43 }
 0x1a5   :  { %v223_v45 = vpop.eup %222 }
 0x1a6   :  { %v144_v46 = vmul.f32 %v221_v39, %v143_v44  ;;  %v150_v47 = vmul.f32 %v223_v45, %v138_v40  ;;  %vm156_vm4 = vweird.f32 %v223_v45 }
 0x1a7   :  { %vm157_vm6 = vmor %vm155_vm5, %vm156_vm4 }
 0x1a8   :  { %v148_v49 = vsel %vm147_vm3, %v221_v39, %v144_v46  ;;  %v151_v50 = vmul.f32 %v223_v45, %v150_v47 }
 0x1a9   :  { %v159_v52 = vmul.f32 %v148_v49, %v127_v27 }
 0x1aa   :  { %v152_v53 = vmul.f32 0.5, %v151_v50 }
 0x1ab   :  { %v164_v54 = vmul.f32 %v218_v48, %v159_v52 }
 0x1ac   :  { %v153_v55 = vsub.f32 1.5, %v152_v53 }
 0x1ad   :  { %v169_v56 = vadd.f32 %v219_v51, %v164_v54 }
 0x1ae   :  { %v154_v57 = vmul.f32 %v223_v45, %v153_v55 }
 0x1af   :  { %171 = vst [vmem:[%s320_s6] sm:$0xff] %v169_v56 }
 0x1b0   :  { %v158_v58 = vsel %vm157_vm6, %v223_v45, %v154_v57 }
 0x1b1   :  { %v160_v59 = vmul.f32 %v158_v58, %v128_v32 }
 0x1b3   :  { %v165_v60 = vmul.f32 %v218_v48, %v160_v59 }
 0x1b5   :  { %v170_v61 = vadd.f32 %v219_v51, %v165_v60 }
 0x1b7   :  { %172 = vst [vmem:[%s320_s6 + $0x8] sm:$0xff] %v170_v61 }

</bundles_post_ra>
